<compile_context>
chip_gen: v7x
topology: tpu7x:2x2x1
jax: 0.10.0
libtpu: 0.0.40
codegen_flags: <defaults>
</compile_context>

<pallas_src>
import numpy as np
import jax
import jax.numpy as jnp
from jax.experimental import pallas as pl
from jax.experimental.pallas import tpu as pltpu

K = 5                     # conv kernel size
H_IN = 28                 # input spatial size (fc1's 320 inputs require 28x28)
O1, O2 = 10, 20           # conv1 / conv2 output channels
H1 = H_IN - K + 1         # 24: conv1 output spatial
P1 = H1 // 2              # 12: after pool1
H2 = P1 - K + 1           # 8 : conv2 output spatial
P2 = H2 // 2              # 4 : after pool2
LANE = 128                # TPU lane width


def _round_up(v, m):
    return ((v + m - 1) // m) * m


# ------------------------------ fused kernel --------------------------------

def _cnn_mnist_kernel(x_ref, c1m_ref, c1b_ref, c2m_ref, c2b_ref,
                      f1w_ref, f1b_ref, f2w_ref, f2b_ref, out_ref):
    tb = x_ref.shape[1]            # batch tile (multiple of 16)
    slab_w = x_ref.shape[2]        # lane-padded K*28*C (256 for C=1)

    # ---- conv1: single (H1*tb, slab_w) x (slab_w, 256) bf16 matmul, f32 acc ----
    lhs1 = x_ref[...].reshape(H1 * tb, slab_w)
    a1 = jnp.dot(lhs1, c1m_ref[...], preferred_element_type=jnp.float32) + c1b_ref[...]

    # ---- 2x2 max-pool + relu ----
    # W-pairs are the two 128-aligned lane halves (parity-split banded columns),
    # H-pairs are adjacent tb-row sublane blocks -> per-vreg maxima only.
    a1 = jnp.maximum(a1[:, :LANE], a1[:, LANE:])                 # (H1*tb, 128)
    a1 = a1.reshape(P1, 2 * tb, LANE)
    p1 = jnp.maximum(jnp.maximum(a1[:, :tb], a1[:, tb:]), 0.0)   # (P1, tb, 128)
    p1 = p1.astype(jnp.bfloat16)

    # ---- conv2: lane-concat the K vertical taps (128-aligned) -> one matmul ----
    lhs2 = jnp.concatenate([p1[di:di + H2] for di in range(K)], axis=-1)
    lhs2 = lhs2.reshape(H2 * tb, K * LANE)                       # (H2*tb, 640)
    a2 = jnp.dot(lhs2, c2m_ref[...], preferred_element_type=jnp.float32) + c2b_ref[...]
    # TODO(synk): nn.Dropout2d is identity at inference (training=False).

    a2 = jnp.maximum(a2[:, :LANE], a2[:, LANE:])                 # (H2*tb, 128)
    a2 = a2.reshape(P2, 2 * tb, LANE)
    p2 = jnp.maximum(jnp.maximum(a2[:, :tb], a2[:, tb:]), 0.0)   # (P2, tb, 128)
    p2 = p2.astype(jnp.bfloat16)

    # ---- fc1 + relu: lane-concat pooled rows -> one (tb,512)x(512,128) dot ----
    lhs3 = jnp.concatenate([p2[i] for i in range(P2)], axis=-1)  # (tb, 512)
    h = jnp.dot(lhs3, f1w_ref[...], preferred_element_type=jnp.float32) + f1b_ref[...]
    h = jnp.maximum(h, 0.0).astype(jnp.bfloat16)                 # (tb, 128)
    # TODO(synk): F.dropout is identity at inference (training=False).

    # ---- fc2 -> lane-dense (tb, 128) logits slab (pad columns are zero) ----
    out_ref[...] = (jnp.dot(h, f2w_ref[...], preferred_element_type=jnp.float32)
                    + f2b_ref[...])


# ------------------------- weight layout preparation ------------------------

def prepare_params(params):
    """One-time conversion of torch-layout params to kernel-friendly bf16 layouts.

    conv RHS columns: col = parity*128 + j*out_ch + oc with output width
    w_o = 2*j + parity, so the 2x2 W-pool is max(left 128 lanes, right 128 lanes).
    """
    c_in = params["conv1_w"].shape[1]
    wc = H_IN * c_in
    slab_w = _round_up(K * wc, LANE)

    # conv1: fused banded RHS over the K vertically-shifted input slabs.
    w1 = np.asarray(params["conv1_w"], np.float32)              # (O1, C, K, K)
    c1m = np.zeros((slab_w, 2 * LANE), np.float32)
    for di in range(K):
        for dj in range(K):
            for j in range(P1):
                for parity in range(2):
                    w_o = 2 * j + parity
                    w_i = w_o + dj
                    r = di * wc + w_i * c_in
                    col = parity * LANE + j * O1
                    c1m[r:r + c_in, col:col + O1] = w1[:, :, di, dj].T
    c1b = np.zeros((1, 2 * LANE), np.float32)
    b1 = np.asarray(params["conv1_b"], np.float32)
    for parity in range(2):
        for j in range(P1):
            c1b[0, parity * LANE + j * O1: parity * LANE + (j + 1) * O1] = b1

    # conv2: rows address the lane-concatenated (K x 128) pooled taps; lanes of
    # p1 >= 120 are padding and map to zero rows.
    w2 = np.asarray(params["conv2_w"], np.float32)              # (O2, O1, K, K)
    c2m = np.zeros((K * LANE, 2 * LANE), np.float32)
    for di in range(K):
        for dj in range(K):
            for j2 in range(P2):
                for parity in range(2):
                    w_o = 2 * j2 + parity
                    j1 = w_o + dj
                    r = di * LANE + j1 * O1
                    col = parity * LANE + j2 * O2
                    c2m[r:r + O1, col:col + O2] = w2[:, :, di, dj].T
    c2b = np.zeros((1, 2 * LANE), np.float32)
    b2 = np.asarray(params["conv2_b"], np.float32)
    for parity in range(2):
        for j2 in range(P2):
            c2b[0, parity * LANE + j2 * O2: parity * LANE + (j2 + 1) * O2] = b2

    # fc1: rows address the lane-concatenated (P2 x 128) pooled rows; torch's
    # NCHW flatten (oc2*16 + h*4 + w) is folded into the row mapping.
    fw1 = np.asarray(params["fc1_w"], np.float32)               # (50, 320)
    f1_out = fw1.shape[0]
    f1w = np.zeros((P2 * LANE, LANE), np.float32)
    for h in range(P2):
        for w in range(P2):
            for oc in range(O2):
                f1w[h * LANE + w * O2 + oc, :f1_out] = fw1[:, oc * P2 * P2 + h * P2 + w]
    f1b = np.zeros((1, LANE), np.float32)
    f1b[0, :f1_out] = np.asarray(params["fc1_b"], np.float32)

    # fc2: lane-dense (128, 128) RHS; f2b kept unpadded so num_classes stays
    # recoverable from a static shape (padded in the wrapper).
    fw2 = np.asarray(params["fc2_w"], np.float32)               # (nc, 50)
    nc = fw2.shape[0]
    f2w = np.zeros((LANE, LANE), np.float32)
    f2w[:f1_out, :nc] = fw2.T
    f2b = np.asarray(params["fc2_b"], np.float32).reshape(1, nc)

    return {
        "c1m": jnp.asarray(c1m, jnp.bfloat16),
        "c1b": jnp.asarray(c1b, jnp.float32),
        "c2m": jnp.asarray(c2m, jnp.bfloat16),
        "c2b": jnp.asarray(c2b, jnp.float32),
        "f1w": jnp.asarray(f1w, jnp.bfloat16),
        "f1b": jnp.asarray(f1b, jnp.float32),
        "f2w": jnp.asarray(f2w, jnp.bfloat16),
        "f2b": jnp.asarray(f2b, jnp.float32),
    }


# ------------------------------- forward ------------------------------------

def cnn_mnist_forward(prep, x_nchw, block_batch=256):
    """Forward pass matching CNNMnist.forward (eval mode). x: (N, C, 28, 28)."""
    n, c, hh, ww = x_nchw.shape
    assert hh == H_IN and ww == H_IN, "fc1's 320 inputs require 28x28 images"
    wc = H_IN * c
    slab_w = prep["c1m"].shape[0]
    assert slab_w == _round_up(K * wc, LANE), "channel count mismatch with prep"

    x_nchw = x_nchw.astype(jnp.float32)
    # Batch tile: multiple of 16 so bf16 (16,128) sublane tiles stay aligned
    # through every leading-dim reshape in the kernel.
    tb = _round_up(min(block_batch, _round_up(n, 16)), 16)
    n_pad = _round_up(n, tb)
    if n_pad != n:
        x_nchw = jnp.pad(x_nchw, ((0, n_pad - n), (0, 0), (0, 0), (0, 0)))

    # (N, C, 28, 28) -> (28, N, 28*C) -> K-tap vertically-shifted slab
    # (H1, N, K*28*C), lane-padded to a multiple of 128, in bf16.
    x_t = jnp.transpose(x_nchw, (2, 0, 3, 1)).reshape(H_IN, n_pad, wc)
    x_slab = jnp.concatenate([x_t[di:di + H1] for di in range(K)], axis=-1)
    if slab_w != K * wc:
        x_slab = jnp.pad(x_slab, ((0, 0), (0, 0), (0, slab_w - K * wc)))
    x_slab = x_slab.astype(jnp.bfloat16)

    nc = prep["f2b"].shape[1]
    f2b = jnp.pad(prep["f2b"], ((0, 0), (0, LANE - nc)))         # (1, 128)

    def full(shape):
        zeros = (0,) * len(shape)
        return pl.BlockSpec(shape, lambda i, _z=zeros: _z)

    flops = 2 * n_pad * (H1 * slab_w * 2 * LANE + H2 * (K * LANE) * 2 * LANE
                         + (P2 * LANE) * LANE + LANE * LANE)
    bytes_accessed = (2 * x_slab.size
                      + 2 * (prep["c1m"].size + prep["c2m"].size
                             + prep["f1w"].size + prep["f2w"].size)
                      + 4 * (prep["c1b"].size + prep["c2b"].size
                             + prep["f1b"].size + f2b.size + n_pad * LANE))

    out = pl.pallas_call(
        _cnn_mnist_kernel,
        out_shape=jax.ShapeDtypeStruct((n_pad, LANE), jnp.float32),
        grid=(n_pad // tb,),
        in_specs=[
            pl.BlockSpec((H1, tb, slab_w), lambda i: (0, i, 0)),
            full(prep["c1m"].shape), full(prep["c1b"].shape),
            full(prep["c2m"].shape), full(prep["c2b"].shape),
            full(prep["f1w"].shape), full(prep["f1b"].shape),
            full(prep["f2w"].shape), full(f2b.shape),
        ],
        out_specs=pl.BlockSpec((tb, LANE), lambda i: (i, 0)),
        compiler_params=pltpu.CompilerParams(
            dimension_semantics=("parallel",),
            vmem_limit_bytes=48 * 1024 * 1024,   # fits v7x's 64 MiB with headroom
        ),
        cost_estimate=pl.CostEstimate(
            flops=int(flops), transcendentals=0, bytes_accessed=int(bytes_accessed)),
    )(x_slab, prep["c1m"], prep["c1b"], prep["c2m"], prep["c2b"],
      prep["f1w"], prep["f1b"], prep["f2w"], f2b)
    return out[:n, :nc]


# ------------------------- params / pure-JAX reference ----------------------

def init_params(key, num_channels=1, num_classes=10):
    ks = jax.random.split(key, 8)
    s = 0.05
    return {
        "conv1_w": s * jax.random.normal(ks[0], (O1, num_channels, K, K), jnp.float32),
        "conv1_b": s * jax.random.normal(ks[1], (O1,), jnp.float32),
        "conv2_w": s * jax.random.normal(ks[2], (O2, O1, K, K), jnp.float32),
        "conv2_b": s * jax.random.normal(ks[3], (O2,), jnp.float32),
        "fc1_w": s * jax.random.normal(ks[4], (50, O2 * P2 * P2), jnp.float32),
        "fc1_b": s * jax.random.normal(ks[5], (50,), jnp.float32),
        "fc2_w": s * jax.random.normal(ks[6], (num_classes, 50), jnp.float32),
        "fc2_b": s * jax.random.normal(ks[7], (num_classes,), jnp.float32),
    }


def _reference_forward(params, x):
    """Plain-JAX reference (eval-mode CNNMnist) for a numerical cross-check."""
    dn = ("NCHW", "OIHW", "NCHW")
    y = jax.lax.conv_general_dilated(x, params["conv1_w"], (1, 1), "VALID",
                                     dimension_numbers=dn)
    y = y + params["conv1_b"][None, :, None, None]
    y = jax.lax.reduce_window(y, -jnp.inf, jax.lax.max, (1, 1, 2, 2), (1, 1, 2, 2), "VALID")
    y = jnp.maximum(y, 0.0)
    y = jax.lax.conv_general_dilated(y, params["conv2_w"], (1, 1), "VALID",
                                     dimension_numbers=dn)
    y = y + params["conv2_b"][None, :, None, None]
    y = jax.lax.reduce_window(y, -jnp.inf, jax.lax.max, (1, 1, 2, 2), (1, 1, 2, 2), "VALID")
    y = jnp.maximum(y, 0.0)
    y = y.reshape(y.shape[0], -1)
    y = jnp.maximum(y @ params["fc1_w"].T + params["fc1_b"], 0.0)
    return y @ params["fc2_w"].T + params["fc2_b"]


if __name__ == "__main__":
    key = jax.random.PRNGKey(0)
    k_x, k_p = jax.random.split(key)

    # MNIST-shaped input (28x28, 1 channel is required by fc1's fixed 320 inputs).
    x = jax.random.normal(k_x, (2, 1, 28, 28), jnp.float32)
    params = init_params(k_p, num_channels=1, num_classes=10)
    prep = prepare_params(params)

    logits = jax.jit(cnn_mnist_forward)(prep, x)
    logits = jax.block_until_ready(logits)
    assert logits.shape == (2, 10) and logits.dtype == jnp.float32

    ref = _reference_forward(params, x)
    max_err = float(jnp.max(jnp.abs(logits - ref)))
    assert max_err < 3e-2, f"kernel/reference mismatch: max_err={max_err}"
    print("KERNEL_OK")
</pallas_src>

<mosaic_0001>
module attributes {stable_mosaic.version = 11 : i64} {
  func.func @_cnn_mnist_kernel(%arg0: i32, %arg1: memref<24x16x256xbf16, #tpu.memory_space<vmem>>, %arg2: memref<256x256xbf16, #tpu.memory_space<vmem>>, %arg3: memref<1x256xf32, #tpu.memory_space<vmem>>, %arg4: memref<640x256xbf16, #tpu.memory_space<vmem>>, %arg5: memref<1x256xf32, #tpu.memory_space<vmem>>, %arg6: memref<512x128xbf16, #tpu.memory_space<vmem>>, %arg7: memref<1x128xf32, #tpu.memory_space<vmem>>, %arg8: memref<128x128xbf16, #tpu.memory_space<vmem>>, %arg9: memref<1x128xf32, #tpu.memory_space<vmem>>, %arg10: memref<16x128xf32, #tpu.memory_space<vmem>>) attributes {dimension_semantics = [#tpu.dimension_semantics<parallel>], iteration_bounds = array<i64: 1>, scalar_prefetch = 0 : i64, scratch_operands = 0 : i64, tpu.core_type = #tpu.core_type<tc>, window_params = [{transform_indices = @transform_0, window_bounds = array<i64: 24, 16, 256>}, {pipeline_mode = #tpu.pipeline_mode<synchronous>, transform_indices = @transform_1, window_bounds = array<i64: 256, 256>}, {pipeline_mode = #tpu.pipeline_mode<synchronous>, transform_indices = @transform_2, window_bounds = array<i64: 1, 256>}, {pipeline_mode = #tpu.pipeline_mode<synchronous>, transform_indices = @transform_3, window_bounds = array<i64: 640, 256>}, {pipeline_mode = #tpu.pipeline_mode<synchronous>, transform_indices = @transform_4, window_bounds = array<i64: 1, 256>}, {pipeline_mode = #tpu.pipeline_mode<synchronous>, transform_indices = @transform_5, window_bounds = array<i64: 512, 128>}, {pipeline_mode = #tpu.pipeline_mode<synchronous>, transform_indices = @transform_6, window_bounds = array<i64: 1, 128>}, {pipeline_mode = #tpu.pipeline_mode<synchronous>, transform_indices = @transform_7, window_bounds = array<i64: 128, 128>}, {pipeline_mode = #tpu.pipeline_mode<synchronous>, transform_indices = @transform_8, window_bounds = array<i64: 1, 128>}, {transform_indices = @transform_9, window_bounds = array<i64: 16, 128>}]} {
    %c0 = arith.constant 0 : index
    %c0_0 = arith.constant 0 : index
    %c0_1 = arith.constant 0 : index
    %0 = vector.load %arg1[%c0, %c0_0, %c0_1] : memref<24x16x256xbf16, #tpu.memory_space<vmem>>, vector<24x16x256xbf16>
    %1 = vector.shape_cast %0 : vector<24x16x256xbf16> to vector<384x256xbf16>
    %c0_2 = arith.constant 0 : index
    %c0_3 = arith.constant 0 : index
    %2 = vector.load %arg2[%c0_2, %c0_3] : memref<256x256xbf16, #tpu.memory_space<vmem>>, vector<256x256xbf16>
    %cst = arith.constant dense<0.000000e+00> : vector<384x256xf32>
    %3 = tpu.matmul %1, %2, %cst {dimension_numbers = #tpu.dot_dimension_numbers<[1], [0], [0], [1], [0, 0, 1, 1], [], []>} : vector<384x256xbf16>, vector<256x256xbf16>, vector<384x256xf32> -> vector<384x256xf32>
    %c0_4 = arith.constant 0 : index
    %c0_5 = arith.constant 0 : index
    %4 = vector.load %arg3[%c0_4, %c0_5] : memref<1x256xf32, #tpu.memory_space<vmem>>, vector<1x256xf32>
    %5 = vector.broadcast %4 : vector<1x256xf32> to vector<384x256xf32>
    %6 = arith.addf %3, %5 : vector<384x256xf32>
    %7 = vector.extract_strided_slice %6 {offsets = [0, 0], sizes = [384, 128], strides = [1, 1]} : vector<384x256xf32> to vector<384x128xf32>
    %8 = vector.extract_strided_slice %6 {offsets = [0, 128], sizes = [384, 128], strides = [1, 1]} : vector<384x256xf32> to vector<384x128xf32>
    %9 = arith.maximumf %7, %8 : vector<384x128xf32>
    %10 = vector.shape_cast %9 : vector<384x128xf32> to vector<12x32x128xf32>
    %11 = vector.extract_strided_slice %10 {offsets = [0, 0, 0], sizes = [12, 16, 128], strides = [1, 1, 1]} : vector<12x32x128xf32> to vector<12x16x128xf32>
    %12 = vector.extract_strided_slice %10 {offsets = [0, 16, 0], sizes = [12, 16, 128], strides = [1, 1, 1]} : vector<12x32x128xf32> to vector<12x16x128xf32>
    %13 = arith.maximumf %11, %12 : vector<12x16x128xf32>
    %cst_6 = arith.constant 0.000000e+00 : f32
    %14 = vector.broadcast %cst_6 : f32 to vector<12x16x128xf32>
    %15 = arith.maximumf %13, %14 : vector<12x16x128xf32>
    %16 = arith.truncf %15 : vector<12x16x128xf32> to vector<12x16x128xbf16>
    %17 = vector.extract_strided_slice %16 {offsets = [0, 0, 0], sizes = [8, 16, 128], strides = [1, 1, 1]} : vector<12x16x128xbf16> to vector<8x16x128xbf16>
    %18 = vector.extract_strided_slice %16 {offsets = [1, 0, 0], sizes = [8, 16, 128], strides = [1, 1, 1]} : vector<12x16x128xbf16> to vector<8x16x128xbf16>
    %19 = vector.extract_strided_slice %16 {offsets = [2, 0, 0], sizes = [8, 16, 128], strides = [1, 1, 1]} : vector<12x16x128xbf16> to vector<8x16x128xbf16>
    %20 = vector.extract_strided_slice %16 {offsets = [3, 0, 0], sizes = [8, 16, 128], strides = [1, 1, 1]} : vector<12x16x128xbf16> to vector<8x16x128xbf16>
    %21 = vector.extract_strided_slice %16 {offsets = [4, 0, 0], sizes = [8, 16, 128], strides = [1, 1, 1]} : vector<12x16x128xbf16> to vector<8x16x128xbf16>
    %22 = tpu.concatenate %17, %18, %19, %20, %21 in 2 : vector<8x16x128xbf16>, vector<8x16x128xbf16>, vector<8x16x128xbf16>, vector<8x16x128xbf16>, vector<8x16x128xbf16> -> vector<8x16x640xbf16>
    %23 = vector.shape_cast %22 : vector<8x16x640xbf16> to vector<128x640xbf16>
    %c0_7 = arith.constant 0 : index
    %c0_8 = arith.constant 0 : index
    %24 = vector.load %arg4[%c0_7, %c0_8] : memref<640x256xbf16, #tpu.memory_space<vmem>>, vector<640x256xbf16>
    %cst_9 = arith.constant dense<0.000000e+00> : vector<128x256xf32>
    %25 = tpu.matmul %23, %24, %cst_9 {dimension_numbers = #tpu.dot_dimension_numbers<[1], [0], [0], [1], [0, 0, 1, 1], [], []>} : vector<128x640xbf16>, vector<640x256xbf16>, vector<128x256xf32> -> vector<128x256xf32>
    %c0_10 = arith.constant 0 : index
    %c0_11 = arith.constant 0 : index
    %26 = vector.load %arg5[%c0_10, %c0_11] : memref<1x256xf32, #tpu.memory_space<vmem>>, vector<1x256xf32>
    %27 = vector.broadcast %26 : vector<1x256xf32> to vector<128x256xf32>
    %28 = arith.addf %25, %27 : vector<128x256xf32>
    %29 = vector.extract_strided_slice %28 {offsets = [0, 0], sizes = [128, 128], strides = [1, 1]} : vector<128x256xf32> to vector<128x128xf32>
    %30 = vector.extract_strided_slice %28 {offsets = [0, 128], sizes = [128, 128], strides = [1, 1]} : vector<128x256xf32> to vector<128x128xf32>
    %31 = arith.maximumf %29, %30 : vector<128x128xf32>
    %32 = vector.shape_cast %31 : vector<128x128xf32> to vector<4x32x128xf32>
    %33 = vector.extract_strided_slice %32 {offsets = [0, 0, 0], sizes = [4, 16, 128], strides = [1, 1, 1]} : vector<4x32x128xf32> to vector<4x16x128xf32>
    %34 = vector.extract_strided_slice %32 {offsets = [0, 16, 0], sizes = [4, 16, 128], strides = [1, 1, 1]} : vector<4x32x128xf32> to vector<4x16x128xf32>
    %35 = arith.maximumf %33, %34 : vector<4x16x128xf32>
    %cst_12 = arith.constant 0.000000e+00 : f32
    %36 = vector.broadcast %cst_12 : f32 to vector<4x16x128xf32>
    %37 = arith.maximumf %35, %36 : vector<4x16x128xf32>
    %38 = arith.truncf %37 : vector<4x16x128xf32> to vector<4x16x128xbf16>
    %39 = vector.extract_strided_slice %38 {offsets = [0, 0, 0], sizes = [1, 16, 128], strides = [1, 1, 1]} : vector<4x16x128xbf16> to vector<1x16x128xbf16>
    %40 = vector.shape_cast %39 : vector<1x16x128xbf16> to vector<16x128xbf16>
    %41 = vector.extract_strided_slice %38 {offsets = [1, 0, 0], sizes = [1, 16, 128], strides = [1, 1, 1]} : vector<4x16x128xbf16> to vector<1x16x128xbf16>
    %42 = vector.shape_cast %41 : vector<1x16x128xbf16> to vector<16x128xbf16>
    %43 = vector.extract_strided_slice %38 {offsets = [2, 0, 0], sizes = [1, 16, 128], strides = [1, 1, 1]} : vector<4x16x128xbf16> to vector<1x16x128xbf16>
    %44 = vector.shape_cast %43 : vector<1x16x128xbf16> to vector<16x128xbf16>
    %45 = vector.extract_strided_slice %38 {offsets = [3, 0, 0], sizes = [1, 16, 128], strides = [1, 1, 1]} : vector<4x16x128xbf16> to vector<1x16x128xbf16>
    %46 = vector.shape_cast %45 : vector<1x16x128xbf16> to vector<16x128xbf16>
    %47 = tpu.concatenate %40, %42, %44, %46 in 1 : vector<16x128xbf16>, vector<16x128xbf16>, vector<16x128xbf16>, vector<16x128xbf16> -> vector<16x512xbf16>
    %c0_13 = arith.constant 0 : index
    %c0_14 = arith.constant 0 : index
    %48 = vector.load %arg6[%c0_13, %c0_14] : memref<512x128xbf16, #tpu.memory_space<vmem>>, vector<512x128xbf16>
    %cst_15 = arith.constant dense<0.000000e+00> : vector<16x128xf32>
    %49 = tpu.matmul %47, %48, %cst_15 {dimension_numbers = #tpu.dot_dimension_numbers<[1], [0], [0], [1], [0, 0, 1, 1], [], []>} : vector<16x512xbf16>, vector<512x128xbf16>, vector<16x128xf32> -> vector<16x128xf32>
    %c0_16 = arith.constant 0 : index
    %c0_17 = arith.constant 0 : index
    %50 = vector.load %arg7[%c0_16, %c0_17] : memref<1x128xf32, #tpu.memory_space<vmem>>, vector<1x128xf32>
    %51 = vector.broadcast %50 : vector<1x128xf32> to vector<16x128xf32>
    %52 = arith.addf %49, %51 : vector<16x128xf32>
    %cst_18 = arith.constant 0.000000e+00 : f32
    %53 = vector.broadcast %cst_18 : f32 to vector<16x128xf32>
    %54 = arith.maximumf %52, %53 : vector<16x128xf32>
    %55 = arith.truncf %54 : vector<16x128xf32> to vector<16x128xbf16>
    %c0_19 = arith.constant 0 : index
    %c0_20 = arith.constant 0 : index
    %56 = vector.load %arg8[%c0_19, %c0_20] : memref<128x128xbf16, #tpu.memory_space<vmem>>, vector<128x128xbf16>
    %cst_21 = arith.constant dense<0.000000e+00> : vector<16x128xf32>
    %57 = tpu.matmul %55, %56, %cst_21 {dimension_numbers = #tpu.dot_dimension_numbers<[1], [0], [0], [1], [0, 0, 1, 1], [], []>} : vector<16x128xbf16>, vector<128x128xbf16>, vector<16x128xf32> -> vector<16x128xf32>
    %c0_22 = arith.constant 0 : index
    %c0_23 = arith.constant 0 : index
    %58 = vector.load %arg9[%c0_22, %c0_23] : memref<1x128xf32, #tpu.memory_space<vmem>>, vector<1x128xf32>
    %59 = vector.broadcast %58 : vector<1x128xf32> to vector<16x128xf32>
    %60 = arith.addf %57, %59 : vector<16x128xf32>
    %c0_24 = arith.constant 0 : index
    %c0_25 = arith.constant 0 : index
    %61 = vector.load %arg10[%c0_24, %c0_25] : memref<16x128xf32, #tpu.memory_space<vmem>>, vector<16x128xf32>
    tpu.vector_store %arg10[%c0_24, %c0_25], %60 {strides = array<i32>} : memref<16x128xf32, #tpu.memory_space<vmem>>, vector<16x128xf32>,
    return
  }
  func.func @transform_0(%arg0: i32) -> (i32, i32, i32) {
    %c0_i32 = arith.constant 0 : i32
    %c0_i32_0 = arith.constant 0 : i32
    %c0_i32_1 = arith.constant 0 : i32
    return %c0_i32, %arg0, %c0_i32_0 : i32, i32, i32
  }
  func.func @transform_1(%arg0: i32) -> (i32, i32) {
    %c0_i32 = arith.constant 0 : i32
    %c0_i32_0 = arith.constant 0 : i32
    %c0_i32_1 = arith.constant 0 : i32
    return %c0_i32, %c0_i32_0 : i32, i32
  }
  func.func @transform_2(%arg0: i32) -> (i32, i32) {
    %c0_i32 = arith.constant 0 : i32
    %c0_i32_0 = arith.constant 0 : i32
    %c0_i32_1 = arith.constant 0 : i32
    return %c0_i32, %c0_i32_0 : i32, i32
  }
  func.func @transform_3(%arg0: i32) -> (i32, i32) {
    %c0_i32 = arith.constant 0 : i32
    %c0_i32_0 = arith.constant 0 : i32
    %c0_i32_1 = arith.constant 0 : i32
    return %c0_i32, %c0_i32_0 : i32, i32
  }
  func.func @transform_4(%arg0: i32) -> (i32, i32) {
    %c0_i32 = arith.constant 0 : i32
    %c0_i32_0 = arith.constant 0 : i32
    %c0_i32_1 = arith.constant 0 : i32
    return %c0_i32, %c0_i32_0 : i32, i32
  }
  func.func @transform_5(%arg0: i32) -> (i32, i32) {
    %c0_i32 = arith.constant 0 : i32
    %c0_i32_0 = arith.constant 0 : i32
    %c0_i32_1 = arith.constant 0 : i32
    return %c0_i32, %c0_i32_0 : i32, i32
  }
  func.func @transform_6(%arg0: i32) -> (i32, i32) {
    %c0_i32 = arith.constant 0 : i32
    %c0_i32_0 = arith.constant 0 : i32
    %c0_i32_1 = arith.constant 0 : i32
    return %c0_i32, %c0_i32_0 : i32, i32
  }
  func.func @transform_7(%arg0: i32) -> (i32, i32) {
    %c0_i32 = arith.constant 0 : i32
    %c0_i32_0 = arith.constant 0 : i32
    %c0_i32_1 = arith.constant 0 : i32
    return %c0_i32, %c0_i32_0 : i32, i32
  }
  func.func @transform_8(%arg0: i32) -> (i32, i32) {
    %c0_i32 = arith.constant 0 : i32
    %c0_i32_0 = arith.constant 0 : i32
    %c0_i32_1 = arith.constant 0 : i32
    return %c0_i32, %c0_i32_0 : i32, i32
  }
  func.func @transform_9(%arg0: i32) -> (i32, i32) {
    %c0_i32 = arith.constant 0 : i32
    %c0_i32_0 = arith.constant 0 : i32
    return %arg0, %c0_i32 : i32, i32
  }
}

</mosaic_0001>

<bundles_post_ra>
// kernel: cnn_mnist_forward.1
= control target key start
LH: loop header
LB: loop body
LE: loop exit
PB: predicated region body
PF: predicated region fallthrough
CT: control target
= control target key end

     0   :  { %vm2895_vm0 = vmmov 0   ;;  %s3762_s1 = inlined_call_operand.vmem [shape: bf16[256,256], index: 1, kind: input, shape index: {}]   ;;  %s3763_s0 = inlined_call_operand.vmem [shape: bf16[24,16,256], index: 0, kind: input, shape index: {}]   ;;  %s3764_s3 = inlined_call_operand.vmem [shape: bf16[640,256], index: 3, kind: input, shape index: {}]   ;;  %s3765_s2 = inlined_call_operand.vmem [shape: f32[1,256], index: 2, kind: input, shape index: {}]   ;;  %s3766_s5 = inlined_call_operand.vmem [shape: bf16[512,128], index: 5, kind: input, shape index: {}]   ;;  %s3767_s4 = inlined_call_operand.vmem [shape: f32[1,256], index: 4, kind: input, shape index: {}]   ;;  %s3768_s7 = inlined_call_operand.vmem [shape: bf16[128,128], index: 7, kind: input, shape index: {}]   ;;  %s3769_s6 = inlined_call_operand.vmem [shape: f32[1,128], index: 6, kind: input, shape index: {}]   ;;  %s3770_s8 = inlined_call_operand.vmem [shape: f32[1,128], index: 8, kind: input, shape index: {}]   ;;  %s3771_s9 = inlined_call_operand.vmem [shape: f32[16,128], index: 9, kind: output, shape index: {}]  }
   0x1   :  { %v2613_v0 = vld [vmem:[%s3762_s1 + $0x4] ss:$8 sps:$4 sm:$0xff]   ;;  %v2615_v1 = vld [vmem:[%s3762_s1] ss:$8 sps:$4 sm:$0xff]   ;;  %v2616_v2 = vld [vmem:[%s3762_s1 + $0x14] ss:$8 sps:$4 sm:$0xff]  }
   0x2   :  { %525 = vmatprep.subr.bf16.mxu0 %v2613_v0  ;;  %v2618_v3 = vld [vmem:[%s3762_s1 + $0x10] ss:$8 sps:$4 sm:$0xff]   ;;  %v2619_v4 = vld [vmem:[%s3762_s1 + $0x24] ss:$8 sps:$4 sm:$0xff]   ;;  %v2621_v5 = vld [vmem:[%s3762_s1 + $0x20] ss:$8 sps:$4 sm:$0xff]  }
   0x3   :  { %526 = vmatpush1.bf16.msra.mxu0 %v2615_v1  ;;  %v2622_v6 = vld [vmem:[%s3762_s1 + $0x34] ss:$8 sps:$4 sm:$0xff]   ;;  %v2624_v7 = vld [vmem:[%s3762_s1 + $0x30] ss:$8 sps:$4 sm:$0xff]   ;;  %v2625_v8 = vld [vmem:[%s3762_s1 + $0x44] ss:$8 sps:$4 sm:$0xff]  }
   0x4   :  { %527 = vmatprep.subr.bf16.mxu0 %v2616_v2  ;;  %v2627_v9 = vld [vmem:[%s3762_s1 + $0x40] ss:$8 sps:$4 sm:$0xff]   ;;  %v2628_v10 = vld [vmem:[%s3762_s1 + $0x54] ss:$8 sps:$4 sm:$0xff]   ;;  %v2630_v11 = vld [vmem:[%s3762_s1 + $0x50] ss:$8 sps:$4 sm:$0xff]  }
   0x5   :  { %v2631_v12 = vld [vmem:[%s3762_s1 + $0x64] ss:$8 sps:$4 sm:$0xff]   ;;  %v2633_v14 = vld [vmem:[%s3762_s1 + $0x60] ss:$8 sps:$4 sm:$0xff]   ;;  %v2634_v15 = vld [vmem:[%s3762_s1 + $0x74] ss:$8 sps:$4 sm:$0xff]  }
   0x6   :  { %v2663_v13 = vld [vmem:[%s3763_s0 + $0x4] ss:$8 sps:$4 sm:$0xff]   ;;  %v2636_v16 = vld [vmem:[%s3762_s1 + $0x70] ss:$8 sps:$4 sm:$0xff]   ;;  %v2639_v18 = vld [vmem:[%s3762_s1 + $0x80] ss:$8 sps:$4 sm:$0xff]  }
   0x7   :  { %528 = vmatpush1.bf16.msra.mxu0 %v2618_v3  ;;  %557 = vmatprep.mubr.bf16.mxu0 %v2663_v13  ;;  %v2637_v17 = vld [vmem:[%s3762_s1 + $0x84] ss:$8 sps:$4 sm:$0xff]   ;;  %v2640_v19 = vld [vmem:[%s3762_s1 + $0x94] ss:$8 sps:$4 sm:$0xff]   ;;  %v2642_v20 = vld [vmem:[%s3762_s1 + $0x90] ss:$8 sps:$4 sm:$0xff]  }
   0x8   :  { %529 = vmatprep.subr.bf16.mxu0 %v2619_v4  ;;  %v2643_v21 = vld [vmem:[%s3762_s1 + $0xa4] ss:$8 sps:$4 sm:$0xff]   ;;  %v2645_v22 = vld [vmem:[%s3762_s1 + $0xa0] ss:$8 sps:$4 sm:$0xff]   ;;  %v2646_v23 = vld [vmem:[%s3762_s1 + $0xb4] ss:$8 sps:$4 sm:$0xff]  }
   0x9   :  { %v2648_v24 = vld [vmem:[%s3762_s1 + $0xb0] ss:$8 sps:$4 sm:$0xff]   ;;  %v2649_v25 = vld [vmem:[%s3762_s1 + $0xc4] ss:$8 sps:$4 sm:$0xff]   ;;  %v2651_v26 = vld [vmem:[%s3762_s1 + $0xc0] ss:$8 sps:$4 sm:$0xff]  }
   0xa   :  { %v2652_v27 = vld [vmem:[%s3762_s1 + $0xd4] ss:$8 sps:$4 sm:$0xff]   ;;  %v2654_v28 = vld [vmem:[%s3762_s1 + $0xd0] ss:$8 sps:$4 sm:$0xff]   ;;  %v2655_v29 = vld [vmem:[%s3762_s1 + $0xe4] ss:$8 sps:$4 sm:$0xff]  }
   0xb   :  { %530 = vmatpush1.bf16.msra.mxu0 %v2621_v5  ;;  %v2657_v30 = vld [vmem:[%s3762_s1 + $0xe0] ss:$8 sps:$4 sm:$0xff]   ;;  %v2658_v31 = vld [vmem:[%s3762_s1 + $0xf4] ss:$8 sps:$4 sm:$0xff]   ;;  %v2660_v32 = vld [vmem:[%s3762_s1 + $0xf0] ss:$8 sps:$4 sm:$0xff]  }
   0xc   :  { %531 = vmatprep.subr.bf16.mxu0 %v2622_v6  ;;  %v2661_v33 = vld [vmem:[%s3763_s0] ss:$8 sps:$4 sm:$0xff]   ;;  %v2664_v34 = vld [vmem:[%s3763_s0 + $0x14] ss:$8 sps:$4 sm:$0xff]   ;;  %v2666_v35 = vld [vmem:[%s3763_s0 + $0x10] ss:$8 sps:$4 sm:$0xff]  }
   0xd   :  { %v2667_v36 = vld [vmem:[%s3763_s0 + $0x24] ss:$8 sps:$4 sm:$0xff]   ;;  %v2669_v37 = vld [vmem:[%s3763_s0 + $0x20] ss:$8 sps:$4 sm:$0xff]   ;;  %v2670_v38 = vld [vmem:[%s3763_s0 + $0x34] ss:$8 sps:$4 sm:$0xff]  }
   0xe   :  { %v2672_v39 = vld [vmem:[%s3763_s0 + $0x30] ss:$8 sps:$4 sm:$0xff]   ;;  %v2673_v40 = vld [vmem:[%s3763_s0 + $0x44] ss:$8 sps:$4 sm:$0xff]   ;;  %v2675_v41 = vld [vmem:[%s3763_s0 + $0x40] ss:$8 sps:$4 sm:$0xff]  }
   0xf   :  { %532 = vmatpush1.bf16.msra.mxu0 %v2624_v7  ;;  %v2676_v42 = vld [vmem:[%s3763_s0 + $0x54] ss:$8 sps:$4 sm:$0xff]   ;;  %v2724_v43 = vld [vmem:[%s3764_s3 + $0x4] ss:$8 sps:$4 sm:$0xff]   ;;  %v2678_v44 = vld [vmem:[%s3763_s0 + $0x50] ss:$8 sps:$4 sm:$0xff]  }
  0x10   :  { %533 = vmatprep.subr.bf16.mxu0 %v2625_v8  ;;  %v2726_v45 = vld [vmem:[%s3764_s3] ss:$8 sps:$4 sm:$0xff]   ;;  %v2679_v46 = vld [vmem:[%s3763_s0 + $0x64] ss:$8 sps:$4 sm:$0xff]   ;;  %1398 = vmatprep.subr.bf16.mxu1 %v2724_v43  ;;  %v2730_v47 = vld [vmem:[%s3764_s3 + $0x14] ss:$8 sps:$4 sm:$0xff]  }
  0x11   :  { %1399 = vmatpush1.bf16.msra.mxu1 %v2726_v45  ;;  %v2732_v48 = vld [vmem:[%s3764_s3 + $0x10] ss:$8 sps:$4 sm:$0xff]   ;;  %v2733_v49 = vld [vmem:[%s3764_s3 + $0x24] ss:$8 sps:$4 sm:$0xff]   ;;  %v2681_v50 = vld [vmem:[%s3763_s0 + $0x60] ss:$8 sps:$4 sm:$0xff]  }
  0x12   :  { %1400 = vmatprep.subr.bf16.mxu1 %v2730_v47  ;;  %v2682_v51 = vld [vmem:[%s3763_s0 + $0x74] ss:$8 sps:$4 sm:$0xff]   ;;  %v2735_v52 = vld [vmem:[%s3764_s3 + $0x20] ss:$8 sps:$4 sm:$0xff]   ;;  %v2738_v54 = vld [vmem:[%s3764_s3 + $0x30] ss:$8 sps:$4 sm:$0xff]  }
  0x13   :  { %534 = vmatpush1.bf16.msra.mxu0 %v2627_v9  ;;  %v2736_v53 = vld [vmem:[%s3764_s3 + $0x34] ss:$8 sps:$4 sm:$0xff]   ;;  %v2739_v55 = vld [vmem:[%s3764_s3 + $0x44] ss:$8 sps:$4 sm:$0xff]   ;;  %v2741_v56 = vld [vmem:[%s3764_s3 + $0x40] ss:$8 sps:$4 sm:$0xff]  }
  0x14   :  { %535 = vmatprep.subr.bf16.mxu0 %v2628_v10  ;;  %v2684_v57 = vld [vmem:[%s3763_s0 + $0x70] ss:$8 sps:$4 sm:$0xff]   ;;  %v2742_v58 = vld [vmem:[%s3764_s3 + $0x54] ss:$8 sps:$4 sm:$0xff]   ;;  %v2685_v59 = vld [vmem:[%s3763_s0 + $0x84] ss:$8 sps:$4 sm:$0xff]  }
  0x15   :  { %1401 = vmatpush1.bf16.msra.mxu1 %v2732_v48  ;;  %v2744_v60 = vld [vmem:[%s3764_s3 + $0x50] ss:$8 sps:$4 sm:$0xff]   ;;  %v2745_v61 = vld [vmem:[%s3764_s3 + $0x64] ss:$8 sps:$4 sm:$0xff]   ;;  %v2687_v62 = vld [vmem:[%s3763_s0 + $0x80] ss:$8 sps:$4 sm:$0xff]  }
  0x16   :  { %1402 = vmatprep.subr.bf16.mxu1 %v2733_v49  ;;  %v2688_v63 = vld [vmem:[%s3763_s0 + $0x94] ss:$8 sps:$4 sm:$0xff]   ;;  %v2690_v0 = vld [vmem:[%s3763_s0 + $0x90] ss:$8 sps:$4 sm:$0xff]   ;;  %v2691_v1 = vld [vmem:[%s3763_s0 + $0xa4] ss:$8 sps:$4 sm:$0xff]   ;;  %v115_v49 = vlaneseq }
  0x17   :  { %536 = vmatpush1.bf16.msra.mxu0 %v2630_v11  ;;  %v2693_v2 = vld [vmem:[%s3763_s0 + $0xa0] ss:$8 sps:$4 sm:$0xff]   ;;  %v2694_v3 = vld [vmem:[%s3763_s0 + $0xb4] ss:$8 sps:$4 sm:$0xff]   ;;  %v2696_v5 = vld [vmem:[%s3763_s0 + $0xb0] ss:$8 sps:$4 sm:$0xff]  }
  0x18   :  { %537 = vmatprep.subr.bf16.mxu0 %v2631_v12  ;;  %v2747_v4 = vld [vmem:[%s3764_s3 + $0x60] ss:$8 sps:$4 sm:$0xff]   ;;  %v2748_v6 = vld [vmem:[%s3764_s3 + $0x74] ss:$8 sps:$4 sm:$0xff]   ;;  %v2697_v7 = vld [vmem:[%s3763_s0 + $0xc4] ss:$8 sps:$4 sm:$0xff]  }
  0x19   :  { %1403 = vmatpush1.bf16.msra.mxu1 %v2735_v52  ;;  %v2750_v8 = vld [vmem:[%s3764_s3 + $0x70] ss:$8 sps:$4 sm:$0xff]   ;;  %v2751_v9 = vld [vmem:[%s3764_s3 + $0x84] ss:$8 sps:$4 sm:$0xff]   ;;  %v2753_v10 = vld [vmem:[%s3764_s3 + $0x80] ss:$8 sps:$4 sm:$0xff]  }
  0x1a   :  { %1404 = vmatprep.subr.bf16.mxu1 %v2736_v53  ;;  %v2699_v11 = vld [vmem:[%s3763_s0 + $0xc0] ss:$8 sps:$4 sm:$0xff]   ;;  %v2754_v12 = vld [vmem:[%s3764_s3 + $0x94] ss:$8 sps:$4 sm:$0xff]   ;;  %v2729_v43 = vld [vmem:[%s3763_s0 + $0x150] ss:$8 sps:$4 sm:$0xff]  }
  0x1b   :  { %538 = vmatpush1.bf16.msra.mxu0 %v2633_v14  ;;  %v2700_v13 = vld [vmem:[%s3763_s0 + $0xd4] ss:$8 sps:$4 sm:$0xff]   ;;  %v2756_v14 = vld [vmem:[%s3764_s3 + $0x90] ss:$8 sps:$4 sm:$0xff]   ;;  %v2774_v45 = vld [vmem:[%s3763_s0 + $0x160] ss:$8 sps:$4 sm:$0xff]  }
  0x1c   :  { %539 = vmatprep.subr.bf16.mxu0 %v2634_v15  ;;  %v2757_v15 = vld [vmem:[%s3764_s3 + $0xa4] ss:$8 sps:$4 sm:$0xff]   ;;  %v2780_v48 = vld [vmem:[%s3763_s0 + $0x170] ss:$8 sps:$4 sm:$0xff]   ;;  %v113_v52 = vld [vmem:[%s3765_s2] sm:$0x3] }
  0x1d   :  { %1405 = vmatpush1.bf16.msra.mxu1 %v2738_v54  ;;  %v2783_v47 = vld [vmem:[%s3764_s3 + $0x104] ss:$8 sps:$4 sm:$0xff]  }
  0x1e   :  { %1406 = vmatprep.subr.bf16.mxu1 %v2739_v55 }
  0x1f   :  { %540 = vmatpush1.bf16.msra.mxu0 %v2636_v16  ;;  %v2759_v16 = vld [vmem:[%s3764_s3 + $0xa0] ss:$8 sps:$4 sm:$0xff]  }
  0x20   :  { %541 = vmatprep.subr.bf16.mxu0 %v2637_v17  ;;  %v2702_v17 = vld [vmem:[%s3763_s0 + $0xd0] ss:$8 sps:$4 sm:$0xff]  }
  0x21   :  { %1407 = vmatpush1.bf16.msra.mxu1 %v2741_v56 }
  0x22   :  { %1408 = vmatprep.subr.bf16.mxu1 %v2742_v58 }
  0x23   :  { %542 = vmatpush1.bf16.msra.mxu0 %v2639_v18  ;;  %v2760_v18 = vld [vmem:[%s3764_s3 + $0xb4] ss:$8 sps:$4 sm:$0xff]  }
  0x24   :  { %543 = vmatprep.subr.bf16.mxu0 %v2640_v19  ;;  %v2703_v19 = vld [vmem:[%s3763_s0 + $0xe4] ss:$8 sps:$4 sm:$0xff]  }
  0x25   :  { %1409 = vmatpush1.bf16.msra.mxu1 %v2744_v60 }
  0x26   :  { %1410 = vmatprep.subr.bf16.mxu1 %v2745_v61 }
  0x27   :  { %544 = vmatpush1.bf16.msra.mxu0 %v2642_v20  ;;  %v2762_v20 = vld [vmem:[%s3764_s3 + $0xb0] ss:$8 sps:$4 sm:$0xff]  }
  0x28   :  { %545 = vmatprep.subr.bf16.mxu0 %v2643_v21  ;;  %v2763_v21 = vld [vmem:[%s3764_s3 + $0xc4] ss:$8 sps:$4 sm:$0xff]  }
  0x29   :  { %1411 = vmatpush1.bf16.msra.mxu1 %v2747_v4 }
  0x2a   :  { %1412 = vmatprep.subr.bf16.mxu1 %v2748_v6 }
  0x2b   :  { %546 = vmatpush1.bf16.msra.mxu0 %v2645_v22  ;;  %v2765_v22 = vld [vmem:[%s3764_s3 + $0xc0] ss:$8 sps:$4 sm:$0xff]  }
  0x2c   :  { %547 = vmatprep.subr.bf16.mxu0 %v2646_v23  ;;  %v2705_v23 = vld [vmem:[%s3763_s0 + $0xe0] ss:$8 sps:$4 sm:$0xff]  }
  0x2d   :  { %1413 = vmatpush1.bf16.msra.mxu1 %v2750_v8 }
  0x2e   :  { %1414 = vmatprep.subr.bf16.mxu1 %v2751_v9 }
  0x2f   :  { %548 = vmatpush1.bf16.msra.mxu0 %v2648_v24  ;;  %v2766_v24 = vld [vmem:[%s3764_s3 + $0xd4] ss:$8 sps:$4 sm:$0xff]  }
  0x30   :  { %549 = vmatprep.subr.bf16.mxu0 %v2649_v25  ;;  %v2706_v25 = vld [vmem:[%s3763_s0 + $0xf4] ss:$8 sps:$4 sm:$0xff]  }
  0x31   :  { %1415 = vmatpush1.bf16.msra.mxu1 %v2753_v10 }
  0x32   :  { %1416 = vmatprep.subr.bf16.mxu1 %v2754_v12 }
  0x33   :  { %550 = vmatpush1.bf16.msra.mxu0 %v2651_v26  ;;  %v2768_v26 = vld [vmem:[%s3764_s3 + $0xd0] ss:$8 sps:$4 sm:$0xff]  }
  0x34   :  { %551 = vmatprep.subr.bf16.mxu0 %v2652_v27  ;;  %v2769_v27 = vld [vmem:[%s3764_s3 + $0xe4] ss:$8 sps:$4 sm:$0xff]  }
  0x35   :  { %1417 = vmatpush1.bf16.msra.mxu1 %v2756_v14 }
  0x36   :  { %1418 = vmatprep.subr.bf16.mxu1 %v2757_v15 }
  0x37   :  { %552 = vmatpush1.bf16.msra.mxu0 %v2654_v28  ;;  %v2771_v28 = vld [vmem:[%s3764_s3 + $0xe0] ss:$8 sps:$4 sm:$0xff]  }
  0x38   :  { %553 = vmatprep.subr.bf16.mxu0 %v2655_v29  ;;  %v2708_v29 = vld [vmem:[%s3763_s0 + $0xf0] ss:$8 sps:$4 sm:$0xff]  }
  0x39   :  { %1419 = vmatpush1.bf16.msra.mxu1 %v2759_v16 }
  0x3a   :  { %1420 = vmatprep.subr.bf16.mxu1 %v2760_v18 }
  0x3b   :  { %554 = vmatpush1.bf16.msra.mxu0 %v2657_v30  ;;  %v2775_v30 = vld [vmem:[%s3764_s3 + $0xf4] ss:$8 sps:$4 sm:$0xff]  }
  0x3c   :  { %555 = vmatprep.subr.bf16.mxu0 %v2658_v31  ;;  %v2709_v31 = vld [vmem:[%s3763_s0 + $0x104] ss:$8 sps:$4 sm:$0xff]  }
  0x3d   :  { %1421 = vmatpush1.bf16.msra.mxu1 %v2762_v20 }
  0x3e   :  { %1422 = vmatprep.subr.bf16.mxu1 %v2763_v21 }
  0x3f   :  { %556 = vmatpush1.bf16.msra.mxu0 %v2660_v32  ;;  %v2777_v32 = vld [vmem:[%s3764_s3 + $0xf0] ss:$8 sps:$4 sm:$0xff]  }
  0x41   :  { %1423 = vmatpush1.bf16.msra.mxu1 %v2765_v22 }
  0x42   :  { %558 = vmatmul.mubr.bf16.vlgmr.msra.gmra.mrb[0].mxu0 %v2661_v33  ;;  %1424 = vmatprep.subr.bf16.mxu1 %v2766_v24  ;;  %v2711_v33 = vld [vmem:[%s3763_s0 + $0x100] ss:$8 sps:$4 sm:$0xff]  }
  0x43   :  { %567 = vmatprep.mubr.bf16.mxu0 %v2664_v34  ;;  %v2712_v34 = vld [vmem:[%s3763_s0 + $0x114] ss:$8 sps:$4 sm:$0xff]  }
  0x45   :  { %1425 = vmatpush1.bf16.msra.mxu1 %v2768_v26 }
  0x46   :  { %1426 = vmatprep.subr.bf16.mxu1 %v2769_v27 }
  0x49   :  { %1427 = vmatpush1.bf16.msra.mxu1 %v2771_v28 }
  0x4a   :  { %568 = vmatmul.mubr.bf16.gmra.mrb[4].mxu0 %v2666_v35  ;;  %1428 = vmatprep.subr.bf16.mxu1 %v2775_v30  ;;  %v2714_v35 = vld [vmem:[%s3763_s0 + $0x110] ss:$8 sps:$4 sm:$0xff]  }
  0x4b   :  { %577 = vmatprep.mubr.bf16.mxu0 %v2667_v36  ;;  %v2715_v36 = vld [vmem:[%s3763_s0 + $0x124] ss:$8 sps:$4 sm:$0xff]  }
  0x4d   :  { %1429 = vmatpush1.bf16.msra.mxu1 %v2777_v32 }
  0x4e   :  { %1511 = vmatprep.subr.bf16.mxu1 %v2783_v47 }
  0x52   :  { %578 = vmatmul.mubr.bf16.gmra.mrb[8].mxu0 %v2669_v37  ;;  %v2717_v37 = vld [vmem:[%s3763_s0 + $0x120] ss:$8 sps:$4 sm:$0xff]  }
  0x53   :  { %587 = vmatprep.mubr.bf16.mxu0 %v2670_v38  ;;  %v2718_v38 = vld [vmem:[%s3763_s0 + $0x134] ss:$8 sps:$4 sm:$0xff]  }
  0x5a   :  { %588 = vmatmul.mubr.bf16.gmra.mrb[12].mxu0 %v2672_v39  ;;  %v2720_v39 = vld [vmem:[%s3763_s0 + $0x130] ss:$8 sps:$4 sm:$0xff]  }
  0x5b   :  { %597 = vmatprep.mubr.bf16.mxu0 %v2673_v40  ;;  %v2721_v40 = vld [vmem:[%s3763_s0 + $0x144] ss:$8 sps:$4 sm:$0xff]  }
  0x62   :  { %598 = vmatmul.mubr.bf16.gmra.mrb[16].mxu0 %v2675_v41  ;;  %v2723_v41 = vld [vmem:[%s3763_s0 + $0x140] ss:$8 sps:$4 sm:$0xff]  }
  0x63   :  { %607 = vmatprep.mubr.bf16.mxu0 %v2676_v42  ;;  %v2727_v42 = vld [vmem:[%s3763_s0 + $0x154] ss:$8 sps:$4 sm:$0xff]  }
  0x6a   :  { %608 = vmatmul.mubr.bf16.gmra.mrb[20].mxu0 %v2678_v44  ;;  %v2772_v44 = vld [vmem:[%s3763_s0 + $0x164] ss:$8 sps:$4 sm:$0xff]  }
  0x6b   :  { %617 = vmatprep.mubr.bf16.mxu0 %v2679_v46  ;;  %v2778_v46 = vld [vmem:[%s3763_s0 + $0x174] ss:$8 sps:$4 sm:$0xff]  }
  0x72   :  { %618 = vmatmul.mubr.bf16.gmra.mrb[24].mxu0 %v2681_v50  ;;  %v3285_v50 = vshrl.u32 %v115_v49, 7 }
  0x73   :  { %627 = vmatprep.mubr.bf16.mxu0 %v2682_v51 }
  0x74   :  { %v117_v51 = vsub.s32 0, %v3285_v50  ;;  %v121_v53 = vsub.s32 1, %v3285_v50 }
  0x76   :  { %v3294_v54 = vrot.slane %v113_v52, %v117_v51  ;;  %v3298_v55 = vrot.slane %v113_v52, %v121_v53 }
  0x7a   :  { %628 = vmatmul.mubr.bf16.gmra.mrb[28].mxu0 %v2684_v57 }
  0x7b   :  { %637 = vmatprep.mubr.bf16.mxu0 %v2685_v59 }
  0x82   :  { %638 = vmatmul.mubr.bf16.gmra.mrb[32].mxu0 %v2687_v62 }
  0x83   :  { %647 = vmatprep.mubr.bf16.mxu0 %v2688_v63 }
  0x8a   :  { %648 = vmatmul.mubr.bf16.gmra.mrb[36].mxu0 %v2690_v0 }
  0x8b   :  { %657 = vmatprep.mubr.bf16.mxu0 %v2691_v1 }
  0x92   :  { %658 = vmatmul.mubr.bf16.gmra.mrb[40].mxu0 %v2693_v2 }
  0x93   :  { %667 = vmatprep.mubr.bf16.mxu0 %v2694_v3 }
  0x9a   :  { %668 = vmatmul.mubr.bf16.gmra.mrb[44].mxu0 %v2696_v5 }
  0x9b   :  { %677 = vmatprep.mubr.bf16.mxu0 %v2697_v7 }
  0xa2   :  { %678 = vmatmul.mubr.bf16.gmra.mrb[48].mxu0 %v2699_v11 }
  0xa3   :  { %687 = vmatprep.mubr.bf16.mxu0 %v2700_v13 }
  0xaa   :  { %688 = vmatmul.mubr.bf16.gmra.mrb[52].mxu0 %v2702_v17 }
  0xab   :  { %697 = vmatprep.mubr.bf16.mxu0 %v2703_v19 }
  0xb2   :  { %698 = vmatmul.mubr.bf16.gmra.mrb[56].mxu0 %v2705_v23 }
  0xb3   :  { %707 = vmatprep.mubr.bf16.mxu0 %v2706_v25 }
  0xba   :  { %708 = vmatmul.mubr.bf16.gmra.mrb[60].mxu0 %v2708_v29 }
  0xbb   :  { %717 = vmatprep.mubr.bf16.mxu0 %v2709_v31 }
  0xc2   :  { %718 = vmatmul.mubr.bf16.gmra.mrb[64].mxu0 %v2711_v33 }
  0xc3   :  { %727 = vmatprep.mubr.bf16.mxu0 %v2712_v34 }
  0xca   :  { %728 = vmatmul.mubr.bf16.gmra.mrb[68].mxu0 %v2714_v35 }
  0xcb   :  { %737 = vmatprep.mubr.bf16.mxu0 %v2715_v36 }
  0xd2   :  { %738 = vmatmul.mubr.bf16.gmra.mrb[72].mxu0 %v2717_v37 }
  0xd3   :  { %747 = vmatprep.mubr.bf16.mxu0 %v2718_v38 }
  0xda   :  { %748 = vmatmul.mubr.bf16.gmra.mrb[76].mxu0 %v2720_v39 }
  0xdb   :  { %757 = vmatprep.mubr.bf16.mxu0 %v2721_v40 }
  0xe2   :  { %758 = vmatmul.mubr.bf16.gmra.mrb[80].mxu0 %v2723_v41 }
  0xe3   :  { %767 = vmatprep.mubr.bf16.mxu0 %v2727_v42 }
  0xea   :  { %768 = vmatmul.mubr.bf16.gmra.mrb[84].mxu0 %v2729_v43 }
  0xeb   :  { %777 = vmatprep.mubr.bf16.mxu0 %v2772_v44 }
  0xf2   :  { %778 = vmatmul.mubr.bf16.gmra.mrb[88].mxu0 %v2774_v45 }
  0xf3   :  { %787 = vmatprep.mubr.bf16.mxu0 %v2778_v46 }
  0xfa   :  { %788 = vmatmul.mubr.bf16.gmra.mrb[92].mxu0 %v2780_v48 }
 0x115   :  { %v559_v56 = vpop.f32.mrb[0].mxu0 }
 0x116   :  { %v560_v57 = vadd.f32 %v559_v56, %v3294_v54  ;;  %v561_v58 = vpop.f32.mrb[1].mxu0  ;;  %v2781_v56 = vld [vmem:[%s3764_s3 + $0x100] ss:$8 sps:$4 sm:$0xff]  }
 0x117   :  { %v562_v59 = vadd.f32 %v561_v58, %v3298_v55  ;;  %v563_v60 = vpop.f32.mrb[2].mxu0 }
 0x118   :  { %v564_v61 = vadd.f32 %v563_v60, %v3294_v54  ;;  %v565_v62 = vpop.f32.mrb[3].mxu0  ;;  %v2784_v60 = vld [vmem:[%s3764_s3 + $0x110] ss:$8 sps:$4 sm:$0xff]  }
 0x119   :  { %v798_v63 = vmax.f32 %v560_v57, %v562_v59  ;;  %v566_v0 = vadd.f32 %v565_v62, %v3298_v55  ;;  %v2786_v57 = vld [vmem:[%s3764_s3 + $0x114] ss:$8 sps:$4 sm:$0xff]  }
 0x11b   :  { %v799_v1 = vmax.f32 %v564_v61, %v566_v0 }
 0x11d   :  { %v569_v2 = vpop.f32.mrb[4].mxu0 }
 0x11e   :  { %v570_v3 = vadd.f32 %v569_v2, %v3294_v54  ;;  %v571_v4 = vpop.f32.mrb[5].mxu0 }
 0x11f   :  { %v572_v5 = vadd.f32 %v571_v4, %v3298_v55  ;;  %v573_v6 = vpop.f32.mrb[6].mxu0 }
 0x120   :  { %v574_v7 = vadd.f32 %v573_v6, %v3294_v54  ;;  %v575_v8 = vpop.f32.mrb[7].mxu0  ;;  %v2787_v6 = vld [vmem:[%s3764_s3 + $0x120] ss:$8 sps:$4 sm:$0xff]  }
 0x121   :  { %v800_v9 = vmax.f32 %v570_v3, %v572_v5  ;;  %v576_v10 = vadd.f32 %v575_v8, %v3298_v55 }
 0x123   :  { %v846_v11 = vmax.f32 %v798_v63, %v800_v9  ;;  %v801_v12 = vmax.f32 %v574_v7, %v576_v10  ;;  %v2789_v63 = vld [vmem:[%s3764_s3 + $0x124] ss:$8 sps:$4 sm:$0xff]   ;;  %v2792_v7 = vld [vmem:[%s3764_s3 + $0x134] ss:$8 sps:$4 sm:$0xff]  }
 0x125   :  { %v847_v13 = vmax.f32 %v799_v1, %v801_v12  ;;  %v579_v14 = vpop.f32.mrb[8].mxu0  ;;  %v870_v17 = vmax.f32 %v846_v11, 0.0  ;;  %v2790_v12 = vld [vmem:[%s3764_s3 + $0x130] ss:$8 sps:$4 sm:$0xff]  }
 0x126   :  { %v580_v15 = vadd.f32 %v579_v14, %v3294_v54  ;;  %v581_v16 = vpop.f32.mrb[9].mxu0 }
 0x127   :  { %v871_v18 = vmax.f32 %v847_v13, 0.0  ;;  %v582_v19 = vadd.f32 %v581_v16, %v3298_v55  ;;  %v583_v20 = vpop.f32.mrb[10].mxu0 }
 0x128   :  { %v584_v21 = vadd.f32 %v583_v20, %v3294_v54  ;;  %v585_v22 = vpop.f32.mrb[11].mxu0 }
 0x129   :  { %v802_v23 = vmax.f32 %v580_v15, %v582_v19  ;;  %v586_v24 = vadd.f32 %v585_v22, %v3298_v55  ;;  %v894_v25 = vpack.c.bf16 %v871_v18, %v870_v17  ;;  %v2795_v15 = vld [vmem:[%s3764_s3 + $0x144] ss:$8 sps:$4 sm:$0xff]  }
 0x12b   :  { %v803_v26 = vmax.f32 %v584_v21, %v586_v24 }
 0x12d   :  { %v589_v27 = vpop.f32.mrb[12].mxu0 }
 0x12e   :  { %v590_v28 = vadd.f32 %v589_v27, %v3294_v54  ;;  %v591_v29 = vpop.f32.mrb[13].mxu0 }
 0x12f   :  { %v592_v30 = vadd.f32 %v591_v29, %v3298_v55  ;;  %v593_v31 = vpop.f32.mrb[14].mxu0  ;;  %v2796_v29 = vld [vmem:[%s3764_s3 + $0x150] ss:$8 sps:$4 sm:$0xff]  }
 0x130   :  { %v594_v32 = vadd.f32 %v593_v31, %v3294_v54  ;;  %v595_v33 = vpop.f32.mrb[15].mxu0 }
 0x131   :  { %v804_v34 = vmax.f32 %v590_v28, %v592_v30  ;;  %v596_v35 = vadd.f32 %v595_v33, %v3298_v55 }
 0x133   :  { %v805_v36 = vmax.f32 %v594_v32, %v596_v35  ;;  %v848_v37 = vmax.f32 %v802_v23, %v804_v34  ;;  %v2801_v32 = vld [vmem:[%s3764_s3 + $0x164] ss:$8 sps:$4 sm:$0xff]  }
 0x135   :  { %v599_v38 = vpop.f32.mrb[16].mxu0  ;;  %v849_v39 = vmax.f32 %v803_v26, %v805_v36  ;;  %v872_v44 = vmax.f32 %v848_v37, 0.0  ;;  %v2798_v26 = vld [vmem:[%s3764_s3 + $0x154] ss:$8 sps:$4 sm:$0xff]  }
 0x136   :  { %v600_v40 = vadd.f32 %v599_v38, %v3294_v54  ;;  %v601_v41 = vpop.f32.mrb[17].mxu0 }
 0x137   :  { %v602_v42 = vadd.f32 %v601_v41, %v3298_v55  ;;  %v603_v43 = vpop.f32.mrb[18].mxu0  ;;  %v873_v45 = vmax.f32 %v849_v39, 0.0  ;;  %v2799_v39 = vld [vmem:[%s3764_s3 + $0x160] ss:$8 sps:$4 sm:$0xff]  }
 0x138   :  { %v604_v46 = vadd.f32 %v603_v43, %v3294_v54  ;;  %v605_v47 = vpop.f32.mrb[19].mxu0 }
 0x139   :  { %v806_v48 = vmax.f32 %v600_v40, %v602_v42  ;;  %v606_v49 = vadd.f32 %v605_v47, %v3298_v55  ;;  %v895_v52 = vpack.c.bf16 %v873_v45, %v872_v44  ;;  %v2804_v40 = vld [vmem:[%s3764_s3 + $0x174] ss:$8 sps:$4 sm:$0xff]   ;;  %v2802_v45 = vld [vmem:[%s3764_s3 + $0x170] ss:$8 sps:$4 sm:$0xff]  }
 0x13b   :  { %v807_v58 = vmax.f32 %v604_v46, %v606_v49  ;;  %1430 = vmatprep.mubr.bf16.mxu1 %v895_v52 }
 0x13c   :  { %1431 = vmatmul.mubr.bf16.vlgmr.msra.gmra.mrb[0].mxu1 %v894_v25  ;;  %v2793_v25 = vld [vmem:[%s3764_s3 + $0x140] ss:$8 sps:$4 sm:$0xff]  }
 0x13d   :  { %v609_v59 = vpop.f32.mrb[20].mxu0  ;;  %1512 = vmatpush1.bf16.msra.mxu1 %v2781_v56 }
 0x13e   :  { %v610_v61 = vadd.f32 %v609_v59, %v3294_v54  ;;  %v611_v62 = vpop.f32.mrb[21].mxu0  ;;  %1513 = vmatprep.subr.bf16.mxu1 %v2786_v57 }
 0x13f   :  { %v612_v0 = vadd.f32 %v611_v62, %v3298_v55  ;;  %v613_v1 = vpop.f32.mrb[22].mxu0 }
 0x140   :  { %v614_v2 = vadd.f32 %v613_v1, %v3294_v54  ;;  %v615_v3 = vpop.f32.mrb[23].mxu0 }
 0x141   :  { %v808_v4 = vmax.f32 %v610_v61, %v612_v0  ;;  %v616_v5 = vadd.f32 %v615_v3, %v3298_v55  ;;  %1514 = vmatpush1.bf16.msra.mxu1 %v2784_v60  ;;  %v2810_v0 = vld [vmem:[%s3764_s3 + $0x194] ss:$8 sps:$4 sm:$0xff]   ;;  %v2808_v3 = vld [vmem:[%s3764_s3 + $0x190] ss:$8 sps:$4 sm:$0xff]  }
 0x142   :  { %1515 = vmatprep.subr.bf16.mxu1 %v2789_v63  ;;  %v2805_v63 = vld [vmem:[%s3764_s3 + $0x180] ss:$8 sps:$4 sm:$0xff]  }
 0x143   :  { %v850_v8 = vmax.f32 %v806_v48, %v808_v4  ;;  %v809_v9 = vmax.f32 %v614_v2, %v616_v5  ;;  %v2807_v48 = vld [vmem:[%s3764_s3 + $0x184] ss:$8 sps:$4 sm:$0xff]  }
 0x145   :  { %v851_v10 = vmax.f32 %v807_v58, %v809_v9  ;;  %v619_v11 = vpop.f32.mrb[24].mxu0  ;;  %1516 = vmatpush1.bf16.msra.mxu1 %v2787_v6  ;;  %v874_v16 = vmax.f32 %v850_v8, 0.0  ;;  %v2813_v6 = vld [vmem:[%s3764_s3 + $0x1a4] ss:$8 sps:$4 sm:$0xff]  }
 0x146   :  { %v620_v13 = vadd.f32 %v619_v11, %v3294_v54  ;;  %v621_v14 = vpop.f32.mrb[25].mxu0  ;;  %1517 = vmatprep.subr.bf16.mxu1 %v2792_v7 }
 0x147   :  { %v875_v17 = vmax.f32 %v851_v10, 0.0  ;;  %v622_v18 = vadd.f32 %v621_v14, %v3298_v55  ;;  %v623_v19 = vpop.f32.mrb[26].mxu0  ;;  %v2816_v14 = vld [vmem:[%s3764_s3 + $0x1b4] ss:$8 sps:$4 sm:$0xff]  }
 0x148   :  { %v624_v20 = vadd.f32 %v623_v19, %v3294_v54  ;;  %v625_v21 = vpop.f32.mrb[27].mxu0  ;;  %v2814_v19 = vld [vmem:[%s3764_s3 + $0x1b0] ss:$8 sps:$4 sm:$0xff]  }
 0x149   :  { %v810_v22 = vmax.f32 %v620_v13, %v622_v18  ;;  %v626_v23 = vadd.f32 %v625_v21, %v3298_v55  ;;  %v3352_v24 = vpack.c.bf16 %v875_v17, %v874_v16  ;;  %1518 = vmatpush1.bf16.msra.mxu1 %v2790_v12  ;;  %v2811_v13 = vld [vmem:[%s3764_s3 + $0x1a0] ss:$8 sps:$4 sm:$0xff]  }
 0x14a   :  { %1519 = vmatprep.subr.bf16.mxu1 %v2795_v15 }
 0x14b   :  { %v811_v27 = vmax.f32 %v624_v20, %v626_v23  ;;  %1440 = vmatprep.mubr.bf16.mxu1 %v3352_v24 }
 0x14c   :  { %1441 = vmatmul.mubr.bf16.gmra.mrb[4].mxu1 %v895_v52 }
 0x14d   :  { %v629_v28 = vpop.f32.mrb[28].mxu0  ;;  %1520 = vmatpush1.bf16.msra.mxu1 %v2793_v25 }
 0x14e   :  { %v630_v30 = vadd.f32 %v629_v28, %v3294_v54  ;;  %v631_v31 = vpop.f32.mrb[29].mxu0  ;;  %1521 = vmatprep.subr.bf16.mxu1 %v2798_v26 }
 0x14f   :  { %v632_v33 = vadd.f32 %v631_v31, %v3298_v55  ;;  %v633_v34 = vpop.f32.mrb[30].mxu0 }
 0x150   :  { %v634_v35 = vadd.f32 %v633_v34, %v3294_v54  ;;  %v635_v36 = vpop.f32.mrb[31].mxu0  ;;  %v2822_v34 = vld [vmem:[%s3764_s3 + $0x1d4] ss:$8 sps:$4 sm:$0xff]  }
 0x151   :  { %v812_v37 = vmax.f32 %v630_v30, %v632_v33  ;;  %v636_v38 = vadd.f32 %v635_v36, %v3298_v55  ;;  %1522 = vmatpush1.bf16.msra.mxu1 %v2796_v29  ;;  %v2817_v33 = vld [vmem:[%s3764_s3 + $0x1c0] ss:$8 sps:$4 sm:$0xff]  }
 0x152   :  { %1523 = vmatprep.subr.bf16.mxu1 %v2801_v32 }
 0x153   :  { %v852_v41 = vmax.f32 %v810_v22, %v812_v37  ;;  %v813_v42 = vmax.f32 %v634_v35, %v636_v38  ;;  %v2819_v22 = vld [vmem:[%s3764_s3 + $0x1c4] ss:$8 sps:$4 sm:$0xff]   ;;  %v2820_v37 = vld [vmem:[%s3764_s3 + $0x1d0] ss:$8 sps:$4 sm:$0xff]  }
 0x155   :  { %v853_v43 = vmax.f32 %v811_v27, %v813_v42  ;;  %v639_v44 = vpop.f32.mrb[32].mxu0  ;;  %1524 = vmatpush1.bf16.msra.mxu1 %v2799_v39  ;;  %v876_v49 = vmax.f32 %v852_v41, 0.0 }
 0x156   :  { %v640_v46 = vadd.f32 %v639_v44, %v3294_v54  ;;  %v641_v47 = vpop.f32.mrb[33].mxu0  ;;  %1525 = vmatprep.subr.bf16.mxu1 %v2804_v40  ;;  %v2825_v40 = vld [vmem:[%s3764_s3 + $0x1e4] ss:$8 sps:$4 sm:$0xff]  }
 0x157   :  { %v877_v52 = vmax.f32 %v853_v43, 0.0  ;;  %v642_v56 = vadd.f32 %v641_v47, %v3298_v55  ;;  %v643_v57 = vpop.f32.mrb[34].mxu0  ;;  %v2823_v47 = vld [vmem:[%s3764_s3 + $0x1e0] ss:$8 sps:$4 sm:$0xff]  }
 0x158   :  { %v644_v58 = vadd.f32 %v643_v57, %v3294_v54  ;;  %v645_v59 = vpop.f32.mrb[35].mxu0 }
 0x159   :  { %v3386_v60 = vpack.c.bf16 %v877_v52, %v876_v49  ;;  %v814_v61 = vmax.f32 %v640_v46, %v642_v56  ;;  %v646_v62 = vadd.f32 %v645_v59, %v3298_v55  ;;  %1526 = vmatpush1.bf16.msra.mxu1 %v2802_v45 }
 0x15a   :  { %1527 = vmatprep.subr.bf16.mxu1 %v2807_v48  ;;  %v2828_v48 = vld [vmem:[%s3764_s3 + $0x1f4] ss:$8 sps:$4 sm:$0xff]  }
 0x15b   :  { %v815_v1 = vmax.f32 %v644_v58, %v646_v62  ;;  %1450 = vmatprep.mubr.bf16.mxu1 %v3386_v60  ;;  %v2826_v58 = vld [vmem:[%s3764_s3 + $0x1f0] ss:$8 sps:$4 sm:$0xff]   ;;  %v2831_v62 = vld [vmem:[%s3764_s3 + $0x204] ss:$8 sps:$4 sm:$0xff]  }
 0x15c   :  { %1451 = vmatmul.mubr.bf16.gmra.mrb[8].mxu1 %v3352_v24 }
 0x15d   :  { %v649_v2 = vpop.f32.mrb[36].mxu0  ;;  %1528 = vmatpush1.bf16.msra.mxu1 %v2805_v63 }
 0x15e   :  { %v650_v4 = vadd.f32 %v649_v2, %v3294_v54  ;;  %v651_v5 = vpop.f32.mrb[37].mxu0  ;;  %1529 = vmatprep.subr.bf16.mxu1 %v2810_v0 }
 0x15f   :  { %v652_v7 = vadd.f32 %v651_v5, %v3298_v55  ;;  %v653_v8 = vpop.f32.mrb[38].mxu0 }
 0x160   :  { %v654_v9 = vadd.f32 %v653_v8, %v3294_v54  ;;  %v655_v10 = vpop.f32.mrb[39].mxu0 }
 0x161   :  { %v816_v11 = vmax.f32 %v650_v4, %v652_v7  ;;  %v656_v12 = vadd.f32 %v655_v10, %v3298_v55  ;;  %1530 = vmatpush1.bf16.msra.mxu1 %v2808_v3 }
 0x162   :  { %1531 = vmatprep.subr.bf16.mxu1 %v2813_v6 }
 0x163   :  { %v854_v15 = vmax.f32 %v814_v61, %v816_v11  ;;  %v817_v16 = vmax.f32 %v654_v9, %v656_v12 }
 0x165   :  { %v855_v17 = vmax.f32 %v815_v1, %v817_v16  ;;  %v659_v18 = vpop.f32.mrb[40].mxu0  ;;  %1532 = vmatpush1.bf16.msra.mxu1 %v2811_v13  ;;  %v878_v23 = vmax.f32 %v854_v15, 0.0 }
 0x166   :  { %v660_v20 = vadd.f32 %v659_v18, %v3294_v54  ;;  %v661_v21 = vpop.f32.mrb[41].mxu0  ;;  %1533 = vmatprep.subr.bf16.mxu1 %v2816_v14 }
 0x167   :  { %v879_v25 = vmax.f32 %v855_v17, 0.0  ;;  %v662_v26 = vadd.f32 %v661_v21, %v3298_v55  ;;  %v663_v27 = vpop.f32.mrb[42].mxu0 }
 0x168   :  { %v664_v28 = vadd.f32 %v663_v27, %v3294_v54  ;;  %v665_v29 = vpop.f32.mrb[43].mxu0 }
 0x169   :  { %v3422_v30 = vpack.c.bf16 %v879_v25, %v878_v23  ;;  %v818_v31 = vmax.f32 %v660_v20, %v662_v26  ;;  %v666_v32 = vadd.f32 %v665_v29, %v3298_v55  ;;  %1534 = vmatpush1.bf16.msra.mxu1 %v2814_v19 }
 0x16a   :  { %1535 = vmatprep.subr.bf16.mxu1 %v2819_v22 }
 0x16b   :  { %v819_v35 = vmax.f32 %v664_v28, %v666_v32  ;;  %1460 = vmatprep.mubr.bf16.mxu1 %v3422_v30 }
 0x16c   :  { %1461 = vmatmul.mubr.bf16.gmra.mrb[12].mxu1 %v3386_v60 }
 0x16d   :  { %v669_v36 = vpop.f32.mrb[44].mxu0  ;;  %1536 = vmatpush1.bf16.msra.mxu1 %v2817_v33 }
 0x16e   :  { %v670_v38 = vadd.f32 %v669_v36, %v3294_v54  ;;  %v671_v39 = vpop.f32.mrb[45].mxu0  ;;  %1537 = vmatprep.subr.bf16.mxu1 %v2822_v34 }
 0x16f   :  { %v672_v41 = vadd.f32 %v671_v39, %v3298_v55  ;;  %v673_v42 = vpop.f32.mrb[46].mxu0 }
 0x170   :  { %v674_v43 = vadd.f32 %v673_v42, %v3294_v54  ;;  %v675_v44 = vpop.f32.mrb[47].mxu0 }
 0x171   :  { %v820_v45 = vmax.f32 %v670_v38, %v672_v41  ;;  %v676_v46 = vadd.f32 %v675_v44, %v3298_v55  ;;  %1538 = vmatpush1.bf16.msra.mxu1 %v2820_v37 }
 0x172   :  { %1539 = vmatprep.subr.bf16.mxu1 %v2825_v40 }
 0x173   :  { %v856_v49 = vmax.f32 %v818_v31, %v820_v45  ;;  %v821_v52 = vmax.f32 %v674_v43, %v676_v46 }
 0x175   :  { %v857_v56 = vmax.f32 %v819_v35, %v821_v52  ;;  %v679_v57 = vpop.f32.mrb[48].mxu0  ;;  %1540 = vmatpush1.bf16.msra.mxu1 %v2823_v47  ;;  %v880_v63 = vmax.f32 %v856_v49, 0.0 }
 0x176   :  { %v680_v59 = vadd.f32 %v679_v57, %v3294_v54  ;;  %v681_v61 = vpop.f32.mrb[49].mxu0  ;;  %1541 = vmatprep.subr.bf16.mxu1 %v2828_v48 }
 0x177   :  { %v881_v0 = vmax.f32 %v857_v56, 0.0  ;;  %v682_v1 = vadd.f32 %v681_v61, %v3298_v55  ;;  %v683_v2 = vpop.f32.mrb[50].mxu0 }
 0x178   :  { %v684_v3 = vadd.f32 %v683_v2, %v3294_v54  ;;  %v685_v4 = vpop.f32.mrb[51].mxu0 }
 0x179   :  { %v3458_v5 = vpack.c.bf16 %v881_v0, %v880_v63  ;;  %v822_v6 = vmax.f32 %v680_v59, %v682_v1  ;;  %v686_v7 = vadd.f32 %v685_v4, %v3298_v55  ;;  %1542 = vmatpush1.bf16.msra.mxu1 %v2826_v58 }
 0x17a   :  { %1624 = vmatprep.subr.bf16.mxu1 %v2831_v62 }
 0x17b   :  { %v823_v8 = vmax.f32 %v684_v3, %v686_v7  ;;  %1470 = vmatprep.mubr.bf16.mxu1 %v3458_v5 }
 0x17c   :  { %1471 = vmatmul.mubr.bf16.gmra.mrb[16].mxu1 %v3422_v30 }
 0x17d   :  { %v689_v9 = vpop.f32.mrb[52].mxu0 }
 0x17e   :  { %v690_v10 = vadd.f32 %v689_v9, %v3294_v54  ;;  %v691_v11 = vpop.f32.mrb[53].mxu0 }
 0x17f   :  { %v692_v12 = vadd.f32 %v691_v11, %v3298_v55  ;;  %v693_v13 = vpop.f32.mrb[54].mxu0 }
 0x180   :  { %v694_v14 = vadd.f32 %v693_v13, %v3294_v54  ;;  %v695_v15 = vpop.f32.mrb[55].mxu0 }
 0x181   :  { %v824_v16 = vmax.f32 %v690_v10, %v692_v12  ;;  %v696_v17 = vadd.f32 %v695_v15, %v3298_v55 }
 0x183   :  { %v858_v18 = vmax.f32 %v822_v6, %v824_v16  ;;  %v825_v19 = vmax.f32 %v694_v14, %v696_v17 }
 0x185   :  { %v859_v20 = vmax.f32 %v823_v8, %v825_v19  ;;  %v699_v21 = vpop.f32.mrb[56].mxu0  ;;  %v882_v25 = vmax.f32 %v858_v18, 0.0 }
 0x186   :  { %v700_v22 = vadd.f32 %v699_v21, %v3294_v54  ;;  %v701_v23 = vpop.f32.mrb[57].mxu0 }
 0x187   :  { %v883_v26 = vmax.f32 %v859_v20, 0.0  ;;  %v702_v27 = vadd.f32 %v701_v23, %v3298_v55  ;;  %v703_v28 = vpop.f32.mrb[58].mxu0 }
 0x188   :  { %v704_v29 = vadd.f32 %v703_v28, %v3294_v54  ;;  %v705_v31 = vpop.f32.mrb[59].mxu0 }
 0x189   :  { %v3470_v32 = vpack.c.bf16 %v883_v26, %v882_v25  ;;  %v826_v33 = vmax.f32 %v700_v22, %v702_v27  ;;  %v706_v34 = vadd.f32 %v705_v31, %v3298_v55 }
 0x18b   :  { %v827_v35 = vmax.f32 %v704_v29, %v706_v34  ;;  %1480 = vmatprep.mubr.bf16.mxu1 %v3470_v32 }
 0x18c   :  { %1481 = vmatmul.mubr.bf16.gmra.mrb[20].mxu1 %v3458_v5 }
 0x18d   :  { %v709_v36 = vpop.f32.mrb[60].mxu0 }
 0x18e   :  { %v710_v37 = vadd.f32 %v709_v36, %v3294_v54  ;;  %v711_v38 = vpop.f32.mrb[61].mxu0  ;;  %v2854_v36 = vld [vmem:[%s3766_s5] sm:$0xff]  }
 0x18f   :  { %v712_v39 = vadd.f32 %v711_v38, %v3298_v55  ;;  %v713_v40 = vpop.f32.mrb[62].mxu0 }
 0x190   :  { %v714_v41 = vadd.f32 %v713_v40, %v3294_v54  ;;  %v715_v42 = vpop.f32.mrb[63].mxu0  ;;  %v2855_v40 = vld [vmem:[%s3766_s5 + $0x48] sm:$0xff]  }
 0x191   :  { %v828_v43 = vmax.f32 %v710_v37, %v712_v39  ;;  %v716_v44 = vadd.f32 %v715_v42, %v3298_v55  ;;  %v2829_v37 = vld [vmem:[%s3764_s3 + $0x200] ss:$8 sps:$4 sm:$0xff]  }
 0x193   :  { %v860_v45 = vmax.f32 %v826_v33, %v828_v43  ;;  %v829_v46 = vmax.f32 %v714_v41, %v716_v44  ;;  %v2853_v33 = vld [vmem:[%s3766_s5 + $0x40] sm:$0xff]   ;;  %v2856_v43 = vld [vmem:[%s3766_s5 + $0x8] sm:$0xff]   ;;  %v2834_v44 = vld [vmem:[%s3764_s3 + $0x214] ss:$8 sps:$4 sm:$0xff]  }
 0x194   :  { %2441 = vmatprep.subr.bf16.mxu0 %v2853_v33 }
 0x195   :  { %v861_v47 = vmax.f32 %v827_v35, %v829_v46  ;;  %v719_v48 = vpop.f32.mrb[64].mxu0  ;;  %v884_v56 = vmax.f32 %v860_v45, 0.0  ;;  %2442 = vmatpush3.bf16.msra.mxu0 %v2854_v36  ;;  %v2844_v36 = vld [vmem:[%s3764_s3 + $0x250] ss:$8 sps:$4 sm:$0xff]  }
 0x196   :  { %v720_v49 = vadd.f32 %v719_v48, %v3294_v54  ;;  %v721_v52 = vpop.f32.mrb[65].mxu0  ;;  %2443 = vmatprep.subr.bf16.mxu0 %v2855_v40  ;;  %v2832_v48 = vld [vmem:[%s3764_s3 + $0x210] ss:$8 sps:$4 sm:$0xff]  }
 0x197   :  { %v885_v57 = vmax.f32 %v861_v47, 0.0  ;;  %v722_v58 = vadd.f32 %v721_v52, %v3298_v55  ;;  %v723_v59 = vpop.f32.mrb[66].mxu0  ;;  %v2857_v47 = vld [vmem:[%s3766_s5 + $0x50] sm:$0xff]  }
 0x198   :  { %v724_v61 = vadd.f32 %v723_v59, %v3294_v54  ;;  %v725_v62 = vpop.f32.mrb[67].mxu0 }
 0x199   :  { %v3482_v63 = vpack.c.bf16 %v885_v57, %v884_v56  ;;  %v830_v0 = vmax.f32 %v720_v49, %v722_v58  ;;  %v726_v1 = vadd.f32 %v725_v62, %v3298_v55  ;;  %v2858_v56 = vld [vmem:[%s3766_s5 + $0x10] sm:$0xff]   ;;  %v2837_v57 = vld [vmem:[%s3764_s3 + $0x224] ss:$8 sps:$4 sm:$0xff]   ;;  %2444 = vmatpush3.bf16.msra.mxu0 %v2856_v43  ;;  %v2859_v58 = vld [vmem:[%s3766_s5 + $0x58] sm:$0xff]  }
 0x19a   :  { %2445 = vmatprep.subr.bf16.mxu0 %v2857_v47 }
 0x19b   :  { %v831_v2 = vmax.f32 %v724_v61, %v726_v1  ;;  %1490 = vmatprep.mubr.bf16.mxu1 %v3482_v63 }
 0x19c   :  { %1491 = vmatmul.mubr.bf16.gmra.mrb[24].mxu1 %v3470_v32 }
 0x19d   :  { %v729_v3 = vpop.f32.mrb[68].mxu0  ;;  %2446 = vmatpush3.bf16.msra.mxu0 %v2858_v56 }
 0x19e   :  { %v730_v4 = vadd.f32 %v729_v3, %v3294_v54  ;;  %v731_v6 = vpop.f32.mrb[69].mxu0  ;;  %2447 = vmatprep.subr.bf16.mxu0 %v2859_v58 }
 0x19f   :  { %v732_v7 = vadd.f32 %v731_v6, %v3298_v55  ;;  %v733_v8 = vpop.f32.mrb[70].mxu0  ;;  %v2840_v6 = vld [vmem:[%s3764_s3 + $0x234] ss:$8 sps:$4 sm:$0xff]  }
 0x1a0   :  { %v734_v9 = vadd.f32 %v733_v8, %v3294_v54  ;;  %v735_v10 = vpop.f32.mrb[71].mxu0 }
 0x1a1   :  { %v832_v11 = vmax.f32 %v730_v4, %v732_v7  ;;  %v736_v12 = vadd.f32 %v735_v10, %v3298_v55 }
 0x1a3   :  { %v862_v13 = vmax.f32 %v830_v0, %v832_v11  ;;  %v833_v14 = vmax.f32 %v734_v9, %v736_v12  ;;  %v2860_v9 = vld [vmem:[%s3766_s5 + $0x18] sm:$0xff]  }
 0x1a4   :  { %2448 = vmatpush3.bf16.msra.mxu0 %v2860_v9 }
 0x1a5   :  { %v863_v15 = vmax.f32 %v831_v2, %v833_v14  ;;  %v739_v16 = vpop.f32.mrb[72].mxu0  ;;  %v886_v19 = vmax.f32 %v862_v13, 0.0  ;;  %v2861_v13 = vld [vmem:[%s3766_s5 + $0x60] sm:$0xff]  }
 0x1a6   :  { %v740_v17 = vadd.f32 %v739_v16, %v3294_v54  ;;  %v741_v18 = vpop.f32.mrb[73].mxu0  ;;  %v2862_v14 = vld [vmem:[%s3766_s5 + $0x20] sm:$0xff]   ;;  %2449 = vmatprep.subr.bf16.mxu0 %v2861_v13 }
 0x1a7   :  { %v887_v20 = vmax.f32 %v863_v15, 0.0  ;;  %v742_v21 = vadd.f32 %v741_v18, %v3298_v55  ;;  %v743_v22 = vpop.f32.mrb[74].mxu0  ;;  %v2838_v15 = vld [vmem:[%s3764_s3 + $0x230] ss:$8 sps:$4 sm:$0xff]  }
 0x1a8   :  { %v744_v23 = vadd.f32 %v743_v22, %v3294_v54  ;;  %v745_v25 = vpop.f32.mrb[75].mxu0  ;;  %v2841_v22 = vld [vmem:[%s3764_s3 + $0x240] ss:$8 sps:$4 sm:$0xff]   ;;  %2450 = vmatpush3.bf16.msra.mxu0 %v2862_v14  ;;  %v2872_v14 = vld [vmem:[%s3766_s5 + $0x90] sm:$0xff]  }
 0x1a9   :  { %v3494_v26 = vpack.c.bf16 %v887_v20, %v886_v19  ;;  %v834_v27 = vmax.f32 %v740_v17, %v742_v21  ;;  %v746_v28 = vadd.f32 %v745_v25, %v3298_v55  ;;  %v2843_v17 = vld [vmem:[%s3764_s3 + $0x244] ss:$8 sps:$4 sm:$0xff]  }
 0x1aa   :  { %v2863_v19 = vld [vmem:[%s3766_s5 + $0x68] sm:$0xff]  }
 0x1ab   :  { %1500 = vmatprep.mubr.bf16.mxu1 %v3494_v26  ;;  %v835_v29 = vmax.f32 %v744_v23, %v746_v28  ;;  %v2846_v28 = vld [vmem:[%s3764_s3 + $0x254] ss:$8 sps:$4 sm:$0xff]   ;;  %2451 = vmatprep.subr.bf16.mxu0 %v2863_v19  ;;  %v2877_v19 = vld [vmem:[%s3766_s5 + $0xe0] sm:$0xff]  }
 0x1ac   :  { %1501 = vmatmul.mubr.bf16.gmra.mrb[28].mxu1 %v3482_v63 }
 0x1ad   :  { %1543 = vmatprep.mubr.bf16.mxu1 %v3386_v60  ;;  %v749_v31 = vpop.f32.mrb[76].mxu0 }
 0x1ae   :  { %v750_v34 = vadd.f32 %v749_v31, %v3294_v54  ;;  %v751_v35 = vpop.f32.mrb[77].mxu0 }
 0x1af   :  { %v752_v38 = vadd.f32 %v751_v35, %v3298_v55  ;;  %v753_v39 = vpop.f32.mrb[78].mxu0 }
 0x1b0   :  { %v754_v41 = vadd.f32 %v753_v39, %v3294_v54  ;;  %v755_v42 = vpop.f32.mrb[79].mxu0 }
 0x1b1   :  { %v836_v45 = vmax.f32 %v750_v34, %v752_v38  ;;  %v756_v46 = vadd.f32 %v755_v42, %v3298_v55 }
 0x1b3   :  { %v864_v49 = vmax.f32 %v834_v27, %v836_v45  ;;  %v837_v52 = vmax.f32 %v754_v41, %v756_v46 }
 0x1b4   :  { %1544 = vmatmul.mubr.bf16.vlgmr.msra.gmra.mrb[0].mxu1 %v3352_v24  ;;  %v2835_v24 = vld [vmem:[%s3764_s3 + $0x220] ss:$8 sps:$4 sm:$0xff]  }
 0x1b5   :  { %1625 = vmatpush1.bf16.msra.mxu1 %v2829_v37  ;;  %1553 = vmatprep.mubr.bf16.mxu1 %v3422_v30  ;;  %v888_v59 = vmax.f32 %v864_v49, 0.0  ;;  %v865_v61 = vmax.f32 %v835_v29, %v837_v52  ;;  %v759_v62 = vpop.f32.mrb[80].mxu0  ;;  %v2864_v29 = vld [vmem:[%s3766_s5 + $0x28] sm:$0xff]  }
 0x1b6   :  { %1626 = vmatprep.subr.bf16.mxu1 %v2834_v44  ;;  %v760_v0 = vadd.f32 %v759_v62, %v3294_v54  ;;  %v761_v1 = vpop.f32.mrb[81].mxu0  ;;  %v2849_v37 = vld [vmem:[%s3764_s3 + $0x264] ss:$8 sps:$4 sm:$0xff]   ;;  %2452 = vmatpush3.bf16.msra.mxu0 %v2864_v29 }
 0x1b7   :  { %v889_v2 = vmax.f32 %v865_v61, 0.0  ;;  %v762_v3 = vadd.f32 %v761_v1, %v3298_v55  ;;  %v763_v4 = vpop.f32.mrb[82].mxu0 }
 0x1b8   :  { %v764_v7 = vadd.f32 %v763_v4, %v3294_v54  ;;  %v765_v8 = vpop.f32.mrb[83].mxu0 }
 0x1b9   :  { %1627 = vmatpush1.bf16.msra.mxu1 %v2832_v48  ;;  %v838_v10 = vmax.f32 %v760_v0, %v762_v3  ;;  %v766_v11 = vadd.f32 %v765_v8, %v3298_v55  ;;  %v3552_v12 = vpack.c.bf16 %v889_v2, %v888_v59  ;;  %v2847_v48 = vld [vmem:[%s3764_s3 + $0x260] ss:$8 sps:$4 sm:$0xff]   ;;  %v2850_v59 = vld [vmem:[%s3764_s3 + $0x270] ss:$8 sps:$4 sm:$0xff]  }
 0x1ba   :  { %1628 = vmatprep.subr.bf16.mxu1 %v2837_v57  ;;  %v2852_v57 = vld [vmem:[%s3764_s3 + $0x274] ss:$8 sps:$4 sm:$0xff]  }
 0x1bb   :  { %v839_v16 = vmax.f32 %v764_v7, %v766_v11 }
 0x1bc   :  { %1554 = vmatmul.mubr.bf16.gmra.mrb[4].mxu1 %v3386_v60 }
 0x1bd   :  { %1563 = vmatprep.mubr.bf16.mxu1 %v3458_v5  ;;  %1629 = vmatpush1.bf16.msra.mxu1 %v2835_v24  ;;  %v769_v18 = vpop.f32.mrb[84].mxu0 }
 0x1be   :  { %1630 = vmatprep.subr.bf16.mxu1 %v2840_v6  ;;  %v770_v20 = vadd.f32 %v769_v18, %v3294_v54  ;;  %v771_v21 = vpop.f32.mrb[85].mxu0  ;;  %v2876_v18 = vld [vmem:[%s3766_s5 + $0x38] sm:$0xff]  }
 0x1bf   :  { %v772_v60 = vadd.f32 %v771_v21, %v3298_v55  ;;  %v773_v23 = vpop.f32.mrb[86].mxu0  ;;  %v2879_v21 = vld [vmem:[%s3766_s5 + $0xe8] sm:$0xff]  }
 0x1c0   :  { %v774_v25 = vadd.f32 %v773_v23, %v3294_v54  ;;  %v775_v27 = vpop.f32.mrb[87].mxu0  ;;  %v2882_v23 = vld [vmem:[%s3766_s5 + $0xb0] sm:$0xff]  }
 0x1c1   :  { %1631 = vmatpush1.bf16.msra.mxu1 %v2838_v15  ;;  %v840_v31 = vmax.f32 %v770_v20, %v772_v60  ;;  %v776_v33 = vadd.f32 %v775_v27, %v3298_v55  ;;  %v2875_v15 = vld [vmem:[%s3766_s5 + $0x78] sm:$0xff]   ;;  %v2878_v20 = vld [vmem:[%s3766_s5 + $0xa0] sm:$0xff]   ;;  %v2880_v60 = vld [vmem:[%s3766_s5 + $0xa8] sm:$0xff]  }
 0x1c2   :  { %1632 = vmatprep.subr.bf16.mxu1 %v2843_v17  ;;  %v2874_v17 = vld [vmem:[%s3766_s5 + $0x98] sm:$0xff]  }
 0x1c3   :  { %v866_v34 = vmax.f32 %v838_v10, %v840_v31  ;;  %v841_v35 = vmax.f32 %v774_v25, %v776_v33  ;;  %v2883_v25 = vld [vmem:[%s3766_s5 + $0xf8] sm:$0xff]  }
 0x1c4   :  { %1564 = vmatmul.mubr.bf16.gmra.mrb[8].mxu1 %v3422_v30  ;;  %v2884_v27 = vld [vmem:[%s3766_s5 + $0xb8] sm:$0xff]  }
 0x1c5   :  { %1573 = vmatprep.mubr.bf16.mxu1 %v3470_v32  ;;  %v890_v38 = vmax.f32 %v866_v34, 0.0  ;;  %1633 = vmatpush1.bf16.msra.mxu1 %v2841_v22  ;;  %v867_v39 = vmax.f32 %v839_v16, %v841_v35  ;;  %v779_v40 = vpop.f32.mrb[88].mxu0  ;;  %v2873_v16 = vld [vmem:[%s3766_s5 + $0xd8] sm:$0xff]   ;;  %v2881_v22 = vld [vmem:[%s3766_s5 + $0xf0] sm:$0xff]  }
 0x1c6   :  { %1634 = vmatprep.subr.bf16.mxu1 %v2846_v28  ;;  %v780_v41 = vadd.f32 %v779_v40, %v3294_v54  ;;  %v781_v42 = vpop.f32.mrb[89].mxu0  ;;  %v986_v28 = vld [vmem:[%s3767_s4] sm:$0x3] }
 0x1c7   :  { %v891_v43 = vmax.f32 %v867_v39, 0.0  ;;  %v782_v44 = vadd.f32 %v781_v42, %v3298_v55  ;;  %v783_v45 = vpop.f32.mrb[90].mxu0  ;;  %v3688_v29 = vrot.slane %v986_v28, %v117_v51  ;;  %v3692_v31 = vrot.slane %v986_v28, %v121_v53 }
 0x1c8   :  { %v784_v46 = vadd.f32 %v783_v45, %v3294_v54  ;;  %v785_v47 = vpop.f32.mrb[91].mxu0 }
 0x1c9   :  { %1635 = vmatpush1.bf16.msra.mxu1 %v2844_v36  ;;  %v904_v49 = vpack.c.bf16 %v891_v43, %v890_v38  ;;  %v842_v52 = vmax.f32 %v780_v41, %v782_v44  ;;  %v786_v56 = vadd.f32 %v785_v47, %v3298_v55 }
 0x1ca   :  { %1636 = vmatprep.subr.bf16.mxu1 %v2849_v37 }
 0x1cb   :  { %v843_v58 = vmax.f32 %v784_v46, %v786_v56 }
 0x1cc   :  { %1574 = vmatmul.mubr.bf16.gmra.mrb[12].mxu1 %v3458_v5 }
 0x1cd   :  { %1583 = vmatprep.mubr.bf16.mxu1 %v3482_v63  ;;  %1637 = vmatpush1.bf16.msra.mxu1 %v2847_v48  ;;  %v789_v61 = vpop.f32.mrb[92].mxu0 }
 0x1ce   :  { %1638 = vmatprep.subr.bf16.mxu1 %v2852_v57  ;;  %v790_v62 = vadd.f32 %v789_v61, %v3294_v54  ;;  %v791_v0 = vpop.f32.mrb[93].mxu0 }
 0x1cf   :  { %v792_v1 = vadd.f32 %v791_v0, %v3298_v55  ;;  %v793_v24 = vpop.f32.mrb[94].mxu0 }
 0x1d0   :  { %v794_v2 = vadd.f32 %v793_v24, %v3294_v54  ;;  %v795_v3 = vpop.f32.mrb[95].mxu0  ;;  %v2893_v54 = vmov 0  }
 0x1d1   :  { %1639 = vmatpush1.bf16.msra.mxu1 %v2850_v59  ;;  %v844_v4 = vmax.f32 %v790_v62, %v792_v1  ;;  %v796_v6 = vadd.f32 %v795_v3, %v3298_v55  ;;  %v2865_v55 = vld [vmem:[%s3766_s5 + $0xc0] sm:$0xff]  }
 0x1d2   :  { %2463 = vmatprep.subr.bf16.mxu1 %v2865_v55 }
 0x1d3   :  { %v868_v7 = vmax.f32 %v842_v52, %v844_v4  ;;  %v845_v8 = vmax.f32 %v794_v2, %v796_v6 }
 0x1d4   :  { %1584 = vmatmul.mubr.bf16.gmra.mrb[16].mxu1 %v3470_v32 }
 0x1d5   :  { %1593 = vmatprep.mubr.bf16.mxu1 %v3494_v26  ;;  %v892_v9 = vmax.f32 %v868_v7, 0.0  ;;  %v869_v10 = vmax.f32 %v843_v58, %v845_v8 }
 0x1d7   :  { %v893_v11 = vmax.f32 %v869_v10, 0.0 }
 0x1d9   :  { %v905_v13 = vpack.c.bf16 %v893_v11, %v892_v9 }
 0x1dc   :  { %1594 = vmatmul.mubr.bf16.gmra.mrb[20].mxu1 %v3482_v63 }
 0x1dd   :  { %1603 = vmatprep.mubr.bf16.mxu1 %v3552_v12 }
 0x1e4   :  { %1604 = vmatmul.mubr.bf16.gmra.mrb[24].mxu1 %v3494_v26 }
 0x1e5   :  { %1613 = vmatprep.mubr.bf16.mxu1 %v904_v49 }
 0x1ec   :  { %1614 = vmatmul.mubr.bf16.gmra.mrb[28].mxu1 %v3552_v12 }
 0x1ed   :  { %1656 = vmatprep.mubr.bf16.mxu1 %v2893_v54 }
 0x1f4   :  { %1657 = vmatmul.mubr.bf16.vlgmr.msra.gmra.mrb[0].mxu1 %v3422_v30  ;;  %v2866_v30 = vld [vmem:[%s3766_s5 + $0x80] sm:$0xff]  }
 0x1f5   :  { %1666 = vmatprep.mubr.bf16.mxu1 %v2893_v54  ;;  %2464 = vmatpush3.bf16.msra.mxu1 %v2866_v30 }
 0x1fc   :  { %1667 = vmatmul.mubr.bf16.gmra.mrb[4].mxu1 %v3458_v5  ;;  %v2867_v5 = vld [vmem:[%s3766_s5 + $0xc8] sm:$0xff]  }
 0x1fd   :  { %1676 = vmatprep.mubr.bf16.mxu1 %v2893_v54  ;;  %2465 = vmatprep.subr.bf16.mxu1 %v2867_v5 }
 0x204   :  { %1677 = vmatmul.mubr.bf16.gmra.mrb[8].mxu1 %v3470_v32  ;;  %v2868_v32 = vld [vmem:[%s3766_s5 + $0x88] sm:$0xff]  }
 0x205   :  { %1686 = vmatprep.mubr.bf16.mxu1 %v2893_v54  ;;  %2466 = vmatpush3.bf16.msra.mxu1 %v2868_v32 }
 0x20c   :  { %1687 = vmatmul.mubr.bf16.gmra.mrb[12].mxu1 %v3482_v63  ;;  %v2869_v63 = vld [vmem:[%s3766_s5 + $0x70] sm:$0xff]  }
 0x20d   :  { %1696 = vmatprep.mubr.bf16.mxu1 %v2893_v54  ;;  %2453 = vmatprep.subr.bf16.mxu0 %v2869_v63 }
 0x214   :  { %1697 = vmatmul.mubr.bf16.gmra.mrb[16].mxu1 %v3494_v26  ;;  %v2870_v26 = vld [vmem:[%s3766_s5 + $0x30] sm:$0xff]  }
 0x215   :  { %1706 = vmatprep.mubr.bf16.mxu1 %v2893_v54  ;;  %2454 = vmatpush3.bf16.msra.mxu0 %v2870_v26 }
 0x216   :  { %2455 = vmatprep.subr.bf16.mxu0 %v2875_v15 }
 0x219   :  { %2456 = vmatpush3.bf16.msra.mxu0 %v2876_v18 }
 0x21c   :  { %1707 = vmatmul.mubr.bf16.gmra.mrb[20].mxu1 %v3552_v12  ;;  %v2871_v12 = vld [vmem:[%s3766_s5 + $0xd0] sm:$0xff]  }
 0x21d   :  { %1716 = vmatprep.mubr.bf16.mxu1 %v2893_v54  ;;  %2467 = vmatprep.subr.bf16.mxu1 %v2871_v12 }
 0x21e   :  { %2468 = vmatpush3.bf16.msra.mxu1 %v2872_v14 }
 0x21f   :  { %2469 = vmatprep.subr.bf16.mxu1 %v2873_v16 }
 0x222   :  { %2470 = vmatpush3.bf16.msra.mxu1 %v2874_v17 }
 0x223   :  { %2471 = vmatprep.subr.bf16.mxu1 %v2877_v19 }
 0x224   :  { %1717 = vmatmul.mubr.bf16.gmra.mrb[24].mxu1 %v904_v49 }
 0x225   :  { %1726 = vmatprep.mubr.bf16.mxu1 %v2893_v54 }
 0x226   :  { %2472 = vmatpush3.bf16.msra.mxu1 %v2878_v20 }
 0x227   :  { %2473 = vmatprep.subr.bf16.mxu1 %v2879_v21 }
 0x22a   :  { %2474 = vmatpush3.bf16.msra.mxu1 %v2880_v60 }
 0x22b   :  { %2475 = vmatprep.subr.bf16.mxu1 %v2881_v22 }
 0x22c   :  { %1727 = vmatmul.mubr.bf16.gmra.mrb[28].mxu1 %v905_v13 }
 0x22e   :  { %2476 = vmatpush3.bf16.msra.mxu1 %v2882_v23 }
 0x22f   :  { %2477 = vmatprep.subr.bf16.mxu1 %v2883_v25 }
 0x232   :  { %2478 = vmatpush3.bf16.msra.mxu1 %v2884_v27 }
 0x2c7   :  { %v1658_v33 = vpop.f32.mrb[0].mxu1 }
 0x2c8   :  { %v2514_v34 = vadd.f32 %v1658_v33, %v3688_v29  ;;  %v1660_v35 = vpop.f32.mrb[1].mxu1 }
 0x2c9   :  { %v2515_v36 = vadd.f32 %v1660_v35, %v3692_v31  ;;  %v1662_v37 = vpop.f32.mrb[2].mxu1 }
 0x2ca   :  { %v2516_v38 = vadd.f32 %v1662_v37, %v3688_v29  ;;  %v1664_v39 = vpop.f32.mrb[3].mxu1 }
 0x2cb   :  { %v1737_v40 = vmax.f32 %v2514_v34, %v2515_v36  ;;  %v2517_v41 = vadd.f32 %v1664_v39, %v3692_v31 }
 0x2cd   :  { %v1738_v42 = vmax.f32 %v2516_v38, %v2517_v41 }
 0x2cf   :  { %v1668_v51 = vpop.f32.mrb[4].mxu1 }
 0x2d0   :  { %v2518_v43 = vadd.f32 %v1668_v51, %v3688_v29  ;;  %v1670_v50 = vpop.f32.mrb[5].mxu1 }
 0x2d1   :  { %v2519_v53 = vadd.f32 %v1670_v50, %v3692_v31  ;;  %v1672_v44 = vpop.f32.mrb[6].mxu1 }
 0x2d2   :  { %v2520_v45 = vadd.f32 %v1672_v44, %v3688_v29  ;;  %v1674_v46 = vpop.f32.mrb[7].mxu1 }
 0x2d3   :  { %v1739_v47 = vmax.f32 %v2518_v43, %v2519_v53  ;;  %v2521_v48 = vadd.f32 %v1674_v46, %v3692_v31 }
 0x2d5   :  { %v1753_v49 = vmax.f32 %v1737_v40, %v1739_v47  ;;  %v1740_v52 = vmax.f32 %v2520_v45, %v2521_v48 }
 0x2d7   :  { %v1754_v56 = vmax.f32 %v1738_v42, %v1740_v52  ;;  %v1678_v57 = vpop.f32.mrb[8].mxu1  ;;  %v1761_v61 = vmax.f32 %v1753_v49, 0.0 }
 0x2d8   :  { %v2522_v58 = vadd.f32 %v1678_v57, %v3688_v29  ;;  %v1680_v59 = vpop.f32.mrb[9].mxu1 }
 0x2d9   :  { %v1762_v62 = vmax.f32 %v1754_v56, 0.0  ;;  %v2523_v0 = vadd.f32 %v1680_v59, %v3692_v31  ;;  %v1682_v1 = vpop.f32.mrb[10].mxu1 }
 0x2da   :  { %v2524_v24 = vadd.f32 %v1682_v1, %v3688_v29  ;;  %v1684_v2 = vpop.f32.mrb[11].mxu1 }
 0x2db   :  { %v1769_v3 = vpack.c.bf16 %v1762_v62, %v1761_v61  ;;  %v1741_v4 = vmax.f32 %v2522_v58, %v2523_v0  ;;  %v2525_v6 = vadd.f32 %v1684_v2, %v3692_v31 }
 0x2dd   :  { %v1742_v7 = vmax.f32 %v2524_v24, %v2525_v6 }
 0x2df   :  { %v1688_v8 = vpop.f32.mrb[12].mxu1 }
 0x2e0   :  { %v2526_v9 = vadd.f32 %v1688_v8, %v3688_v29  ;;  %v1690_v10 = vpop.f32.mrb[13].mxu1 }
 0x2e1   :  { %v2527_v11 = vadd.f32 %v1690_v10, %v3692_v31  ;;  %v1692_v13 = vpop.f32.mrb[14].mxu1 }
 0x2e2   :  { %v2528_v54 = vadd.f32 %v1692_v13, %v3688_v29  ;;  %v1694_v55 = vpop.f32.mrb[15].mxu1  ;;  %v2885_v13 = vld [vmem:[%s3768_s7] sm:$0xff]  }
 0x2e3   :  { %v1743_v30 = vmax.f32 %v2526_v9, %v2527_v11  ;;  %v2529_v5 = vadd.f32 %v1694_v55, %v3692_v31  ;;  %v2894_v11 = vmov 0.0   ;;  %v2889_v55 = vld [vmem:[%s3768_s7 + $0x20] sm:$0xff]  }
 0x2e4   :  { %2494 = vmatprep.subr.bf16.mxu0 %v2894_v11 }
 0x2e5   :  { %v1755_v32 = vmax.f32 %v1741_v4, %v1743_v30  ;;  %v1744_v63 = vmax.f32 %v2528_v54, %v2529_v5  ;;  %v2888_v54 = vld [vmem:[%s3768_s7 + $0x18] sm:$0xff]   ;;  %v2890_v30 = vld [vmem:[%s3768_s7 + $0x28] sm:$0xff]   ;;  %v2891_v5 = vld [vmem:[%s3768_s7 + $0x30] sm:$0xff]  }
 0x2e7   :  { %v1756_v26 = vmax.f32 %v1742_v7, %v1744_v63  ;;  %v1698_v12 = vpop.f32.mrb[16].mxu1  ;;  %v1763_v16 = vmax.f32 %v1755_v32, 0.0  ;;  %v2892_v32 = vld [vmem:[%s3768_s7 + $0x38] sm:$0xff]  }
 0x2e8   :  { %v2530_v14 = vadd.f32 %v1698_v12, %v3688_v29  ;;  %v1700_v15 = vpop.f32.mrb[17].mxu1 }
 0x2e9   :  { %v1764_v17 = vmax.f32 %v1756_v26, 0.0  ;;  %v2531_v18 = vadd.f32 %v1700_v15, %v3692_v31  ;;  %v1702_v19 = vpop.f32.mrb[18].mxu1 }
 0x2ea   :  { %v2532_v20 = vadd.f32 %v1702_v19, %v3688_v29  ;;  %v1704_v21 = vpop.f32.mrb[19].mxu1 }
 0x2eb   :  { %v1745_v60 = vmax.f32 %v2530_v14, %v2531_v18  ;;  %v2533_v22 = vadd.f32 %v1704_v21, %v3692_v31  ;;  %v1770_v23 = vpack.c.bf16 %v1764_v17, %v1763_v16  ;;  %v2399_v17 = vld [vmem:[%s3769_s6] ss:$0 sm:$0xff] }
 0x2ed   :  { %v1746_v25 = vmax.f32 %v2532_v20, %v2533_v22  ;;  %2068 = vmatprep.mubr.bf16.mxu0 %v1770_v23 }
 0x2ee   :  { %2069 = vmatmul.mubr.bf16.vlgmr.msra.gmra.mrb[96].mxu0 %v1769_v3 }
 0x2ef   :  { %v1708_v27 = vpop.f32.mrb[20].mxu1  ;;  %2495 = vmatpush3.bf16.msra.mxu0 %v2885_v13  ;;  %2510 = vmatprep.mubr.msk.bf16.mxu0 %vm2895_vm0, %v2894_v11 }
 0x2f0   :  { %v2534_v28 = vadd.f32 %v1708_v27, %v3688_v29  ;;  %v1710_v33 = vpop.f32.mrb[21].mxu1  ;;  %2496 = vmatprep.subr.bf16.mxu0 %v2894_v11 }
 0x2f1   :  { %v2535_v34 = vadd.f32 %v1710_v33, %v3692_v31  ;;  %v1712_v35 = vpop.f32.mrb[22].mxu1 }
 0x2f2   :  { %v2536_v36 = vadd.f32 %v1712_v35, %v3688_v29  ;;  %v1714_v37 = vpop.f32.mrb[23].mxu1 }
 0x2f3   :  { %v1747_v38 = vmax.f32 %v2534_v28, %v2535_v34  ;;  %v2537_v39 = vadd.f32 %v1714_v37, %v3692_v31 }
 0x2f5   :  { %v1757_v40 = vmax.f32 %v1745_v60, %v1747_v38  ;;  %v1748_v41 = vmax.f32 %v2536_v36, %v2537_v39  ;;  %v2432_v36 = vld [vmem:[%s3770_s8] ss:$0 sm:$0xff] }
 0x2f7   :  { %v1758_v42 = vmax.f32 %v1746_v25, %v1748_v41  ;;  %v1718_v51 = vpop.f32.mrb[24].mxu1  ;;  %v1765_v53 = vmax.f32 %v1757_v40, 0.0 }
 0x2f8   :  { %v2538_v43 = vadd.f32 %v1718_v51, %v3688_v29  ;;  %v1720_v50 = vpop.f32.mrb[25].mxu1 }
 0x2f9   :  { %v1766_v44 = vmax.f32 %v1758_v42, 0.0  ;;  %v2539_v45 = vadd.f32 %v1720_v50, %v3692_v31  ;;  %v1722_v46 = vpop.f32.mrb[26].mxu1 }
 0x2fa   :  { %v2540_v47 = vadd.f32 %v1722_v46, %v3688_v29  ;;  %v1724_v48 = vpop.f32.mrb[27].mxu1 }
 0x2fb   :  { %v1771_v49 = vpack.c.bf16 %v1766_v44, %v1765_v53  ;;  %v1749_v52 = vmax.f32 %v2538_v43, %v2539_v45  ;;  %v2541_v56 = vadd.f32 %v1724_v48, %v3692_v31 }
 0x2fd   :  { %v1750_v57 = vmax.f32 %v2540_v47, %v2541_v56 }
 0x2ff   :  { %v1728_v58 = vpop.f32.mrb[28].mxu1 }
 0x300   :  { %v2542_v59 = vadd.f32 %v1728_v58, %v3688_v29  ;;  %v1730_v61 = vpop.f32.mrb[29].mxu1 }
 0x301   :  { %v2543_v62 = vadd.f32 %v1730_v61, %v3692_v31  ;;  %v1732_v0 = vpop.f32.mrb[30].mxu1 }
 0x302   :  { %v2544_v1 = vadd.f32 %v1732_v0, %v3688_v29  ;;  %v1734_v24 = vpop.f32.mrb[31].mxu1  ;;  %v2886_v29 = vld [vmem:[%s3768_s7 + $0x8] sm:$0xff]  }
 0x303   :  { %v1751_v2 = vmax.f32 %v2542_v59, %v2543_v62  ;;  %v2545_v3 = vadd.f32 %v1734_v24, %v3692_v31  ;;  %v2887_v31 = vld [vmem:[%s3768_s7 + $0x10] sm:$0xff]   ;;  %2497 = vmatpush3.bf16.msra.mxu0 %v2886_v29 }
 0x304   :  { %2498 = vmatprep.subr.bf16.mxu0 %v2894_v11 }
 0x305   :  { %v1759_v4 = vmax.f32 %v1749_v52, %v1751_v2  ;;  %v1752_v6 = vmax.f32 %v2544_v1, %v2545_v3 }
 0x307   :  { %v1760_v7 = vmax.f32 %v1750_v57, %v1752_v6  ;;  %v1767_v8 = vmax.f32 %v1759_v4, 0.0  ;;  %2499 = vmatpush3.bf16.msra.mxu0 %v2887_v31 }
 0x308   :  { %2500 = vmatprep.subr.bf16.mxu0 %v2894_v11 }
 0x309   :  { %v1768_v9 = vmax.f32 %v1760_v7, 0.0 }
 0x30b   :  { %v1772_v10 = vpack.c.bf16 %v1768_v9, %v1767_v8  ;;  %2501 = vmatpush3.bf16.msra.mxu0 %v2888_v54 }
 0x30c   :  { %2502 = vmatprep.subr.bf16.mxu0 %v2894_v11 }
 0x30d   :  { %2109 = vmatprep.mubr.bf16.mxu1 %v1772_v10 }
 0x30e   :  { %2110 = vmatmul.mubr.bf16.vlgmr.msra.gmra.mrb[32].mxu1 %v1771_v49 }
 0x30f   :  { %2503 = vmatpush3.bf16.msra.mxu0 %v2889_v55 }
 0x310   :  { %2504 = vmatprep.subr.bf16.mxu0 %v2894_v11 }
 0x313   :  { %2505 = vmatpush3.bf16.msra.mxu0 %v2890_v30 }
 0x314   :  { %2506 = vmatprep.subr.bf16.mxu0 %v2894_v11 }
 0x317   :  { %2507 = vmatpush3.bf16.msra.mxu0 %v2891_v5 }
 0x318   :  { %2508 = vmatprep.subr.bf16.mxu0 %v2894_v11 }
 0x31b   :  { %2509 = vmatpush3.bf16.msra.mxu0 %v2892_v32 }
 0x3c1   :  { %v2457_v63 = vpop.f32.mrb[96].mxu0 }
 0x3c2   :  { %v2458_v26 = vpop.f32.mrb[97].mxu0 }
 0x3c3   :  { %v2459_v12 = vadd.f32 %v2458_v26, %v2457_v63  ;;  %v2460_v14 = vpop.f32.mrb[98].mxu0 }
 0x3c4   :  { %v2461_v15 = vpop.f32.mrb[99].mxu0 }
 0x3c5   :  { %v2462_v16 = vadd.f32 %v2461_v15, %v2460_v14  ;;  %v2071_v20 = vadd.f32 %v2459_v12, %v2399_v17 }
 0x3c7   :  { %v2074_v23 = vadd.f32 %v2462_v16, %v2399_v17 }
 0x3e1   :  { %v2479_v18 = vpop.f32.mrb[32].mxu1 }
 0x3e2   :  { %v2480_v19 = vpop.f32.mrb[33].mxu1 }
 0x3e3   :  { %v2481_v21 = vadd.f32 %v2480_v19, %v2479_v18  ;;  %v2482_v60 = vpop.f32.mrb[34].mxu1 }
 0x3e4   :  { %v2483_v22 = vpop.f32.mrb[35].mxu1 }
 0x3e5   :  { %v2112_v25 = vadd.f32 %v2481_v21, %v2071_v20  ;;  %v2484_v27 = vadd.f32 %v2483_v22, %v2482_v60 }
 0x3e7   :  { %v2115_v28 = vadd.f32 %v2484_v27, %v2074_v23  ;;  %v2118_v33 = vmax.f32 %v2112_v25, 0.0 }
 0x3e9   :  { %v2119_v34 = vmax.f32 %v2115_v28, 0.0 }
 0x3eb   :  { %v2120_v35 = vpack.c.bf16 %v2119_v34, %v2118_v33 }
 0x3ed   :  { %2511 = vmatmul.mubr.bf16.vlgmr.msra.gmra.mrb[100].mxu0 %v2120_v35 }
 0x4c0   :  { %v2226_v37 = vpop.f32.mrb[100].mxu0 }
 0x4c1   :  { %v2227_v38 = vadd.f32 %v2432_v36, %v2226_v37  ;;  %v2512_v39 = vpop.f32.mrb[101].mxu0 }
 0x4c2   :  { %v2229_v40 = vpop.f32.mrb[102].mxu0 }
 0x4c3   :  { %2233 = vst [vmem:[%s3771_s9] sm:$0xff] %v2227_v38  ;;  %v2230_v41 = vadd.f32 %v2432_v36, %v2229_v40  ;;  %v2513_v42 = vpop.f32.mrb[103].mxu0 }
 0x4c5   :  { %2234 = vst [vmem:[%s3771_s9 + $0x8] sm:$0xff] %v2230_v41 }

</bundles_post_ra>
